<compile_context>
chip_gen: v5e
topology: v5e:2x2
jax: 0.10.0
libtpu: 0.0.40
codegen_flags: <defaults>
</compile_context>

<pallas_src>
import functools

import jax
import jax.numpy as jnp
from jax.experimental import pallas as pl
from jax.experimental.pallas import tpu as pltpu

# Small demo configuration (scaled-down GPT-2, consistent with the module).
VOCAB_SIZE = 512
EMBED_SIZE = 32
HEADS = 4
NUM_LAYERS = 2
BATCH = 2
SEQ_LEN = 8
LN_EPS = 1e-5


# ----------------------------------------------------------------------------
# BlockSpec helper: whole array as one block, single grid step.
# ----------------------------------------------------------------------------
def _full_spec(shape):
    return pl.BlockSpec(shape, lambda *_: (0,) * len(shape))


# ----------------------------------------------------------------------------
# Kernels
# ----------------------------------------------------------------------------
def _embed_kernel(ids_ref, table_ref, o_ref):
    # ids_ref: (NS, 1) int32, table_ref: (vocab, E), o_ref: (NS, E)
    ids = ids_ref[...]
    ns = ids.shape[0]
    vocab = table_ref.shape[0]
    onehot = (jax.lax.broadcasted_iota(jnp.int32, (ns, vocab), 1) == ids
              ).astype(jnp.float32)
    o_ref[...] = jnp.dot(onehot, table_ref[...],
                         preferred_element_type=jnp.float32)


def _layer_norm(x, w, b, eps):
    mu = jnp.mean(x, axis=-1, keepdims=True)
    xc = x - mu
    var = jnp.mean(xc * xc, axis=-1, keepdims=True)
    return xc * jax.lax.rsqrt(var + eps) * w + b


def _transformer_block_kernel(x_ref, bias_ref, wq_ref, wk_ref, wv_ref,
                              wo_ref, bo_ref, ln1w_ref, ln1b_ref,
                              w1_ref, b1_ref, w2_ref, b2_ref,
                              ln2w_ref, ln2b_ref, o_ref,
                              *, heads, head_dim, eps):
    x = x_ref[...]                                    # (NS, E) f32
    ns = x.shape[0]

    # ---- multi-head attention: all heads & batches in one set of matmuls ----
    # wq/wk/wv are host-built block-diagonal (E,E) matrices (wq also carries
    # the 1/sqrt(E) softmax scale), so each projection is one MXU matmul.
    q = jnp.dot(x, wq_ref[...], preferred_element_type=jnp.float32)   # (NS, E)
    k = jnp.dot(x, wk_ref[...], preferred_element_type=jnp.float32)
    v = jnp.dot(x, wv_ref[...], preferred_element_type=jnp.float32)

    # Stack heads along rows -> (H*NS, head_dim); row index = h*NS + (n*S + s).
    # (static lane slices + sublane concat: pure layout plumbing, no matmuls)
    def stack_heads(t):
        return jnp.concatenate(
            [t[:, h * head_dim:(h + 1) * head_dim] for h in range(heads)],
            axis=0)

    qh = stack_heads(q)
    kh = stack_heads(k)
    vh = stack_heads(v)

    # One contraction gives energies for every (batch, head, q, k) pair.
    energy = jax.lax.dot_general(
        qh, kh, dimension_numbers=(((1,), (1,)), ((), ())),
        preferred_element_type=jnp.float32)            # (H*NS, H*NS)
    # Additive bias (precomputed on host): 0 where (same batch, same head,
    # user mask keeps), -1e20/sqrt(E) elsewhere -> matches torch masked_fill
    # followed by the /sqrt(E) scale.
    energy = energy + bias_ref[...]

    m = jnp.max(energy, axis=-1, keepdims=True)
    p = jnp.exp(energy - m)
    denom = jnp.sum(p, axis=-1, keepdims=True)
    attn = p * pl.reciprocal(denom, approx=True)       # EUP reciprocal

    ctx = jnp.dot(attn, vh, preferred_element_type=jnp.float32)   # (H*NS, hd)
    # Un-stack heads back to (NS, E) with head-major column layout.
    ctx = jnp.concatenate(
        [ctx[h * ns:(h + 1) * ns, :] for h in range(heads)], axis=1)

    attn_out = jnp.dot(ctx, wo_ref[...],
                       preferred_element_type=jnp.float32) + bo_ref[...]

    # ---- residual + LayerNorm 1 ----
    h1 = _layer_norm(attn_out + x, ln1w_ref[...], ln1b_ref[...], eps)

    # ---- feed-forward (Linear -> ReLU -> Linear) ----
    f = jnp.dot(h1, w1_ref[...], preferred_element_type=jnp.float32) + b1_ref[...]
    f = jnp.maximum(f, 0.0)
    f = jnp.dot(f, w2_ref[...], preferred_element_type=jnp.float32) + b2_ref[...]

    # ---- residual + LayerNorm 2 ----
    o_ref[...] = _layer_norm(f + h1, ln2w_ref[...], ln2b_ref[...],
                             eps).astype(o_ref.dtype)


def _lm_head_kernel(x_ref, w_ref, b_ref, o_ref):
    # x: (NS, E), w: (E, vocab) pre-transposed, b: (1, vocab) -> (NS, vocab)
    o_ref[...] = (jnp.dot(x_ref[...], w_ref[...],
                          preferred_element_type=jnp.float32)
                  + b_ref[...]).astype(o_ref.dtype)


# ----------------------------------------------------------------------------
# pallas_call wrappers (all single-invocation, lane-dense where possible)
# ----------------------------------------------------------------------------
def _embedding_pallas(ids_col, table):
    ns = ids_col.shape[0]
    vocab, e = table.shape
    return pl.pallas_call(
        _embed_kernel,
        out_shape=jax.ShapeDtypeStruct((ns, e), jnp.float32),
        grid_spec=pltpu.PrefetchScalarGridSpec(
            num_scalar_prefetch=0, grid=(1,),
            in_specs=[_full_spec((ns, 1)), _full_spec((vocab, e))],
            out_specs=_full_spec((ns, e))),
        compiler_params=pltpu.CompilerParams(
            dimension_semantics=("arbitrary",)),
    )(ids_col, table)


def _transformer_block_pallas(x, attn_bias, lp, *, heads, head_dim):
    ns, e = x.shape
    r = attn_bias.shape[0]
    hidden = lp['w1_t'].shape[1]
    kernel = functools.partial(_transformer_block_kernel,
                               heads=heads, head_dim=head_dim, eps=LN_EPS)
    return pl.pallas_call(
        kernel,
        out_shape=jax.ShapeDtypeStruct((ns, e), jnp.float32),
        grid_spec=pltpu.PrefetchScalarGridSpec(
            num_scalar_prefetch=0, grid=(1,),
            in_specs=[_full_spec((ns, e)), _full_spec((r, r)),
                      _full_spec((e, e)), _full_spec((e, e)), _full_spec((e, e)),
                      _full_spec((e, e)), _full_spec((1, e)),
                      _full_spec((1, e)), _full_spec((1, e)),
                      _full_spec((e, hidden)), _full_spec((1, hidden)),
                      _full_spec((hidden, e)), _full_spec((1, e)),
                      _full_spec((1, e)), _full_spec((1, e))],
            out_specs=_full_spec((ns, e))),
        compiler_params=pltpu.CompilerParams(
            dimension_semantics=("arbitrary",)),
    )(x, attn_bias, lp['wq_blk'], lp['wk_blk'], lp['wv_blk'],
      lp['wo_t'], lp['bo'], lp['ln1_w'], lp['ln1_b'],
      lp['w1_t'], lp['b1'], lp['w2_t'], lp['b2'], lp['ln2_w'], lp['ln2_b'])


def _lm_head_pallas(x, w_t, b_row):
    ns, e = x.shape
    vocab = w_t.shape[1]
    return pl.pallas_call(
        _lm_head_kernel,
        out_shape=jax.ShapeDtypeStruct((ns, vocab), jnp.float32),
        grid_spec=pltpu.PrefetchScalarGridSpec(
            num_scalar_prefetch=0, grid=(1,),
            in_specs=[_full_spec((ns, e)), _full_spec((e, vocab)),
                      _full_spec((1, vocab))],
            out_specs=_full_spec((ns, vocab))),
        compiler_params=pltpu.CompilerParams(
            dimension_semantics=("arbitrary",)),
    )(x, w_t, b_row)


# ----------------------------------------------------------------------------
# Host-side weight / bias preparation (transposes, block-diag, scale folding)
# ----------------------------------------------------------------------------
def _prepare_layer(p, *, heads, embed_size):
    eye = jnp.eye(heads, dtype=jnp.float32)
    scale = jnp.float32(1.0 / (embed_size ** 0.5))
    return {
        'wq_blk': jnp.kron(eye, p['wq'].T) * scale,  # softmax scale folded in
        'wk_blk': jnp.kron(eye, p['wk'].T),
        'wv_blk': jnp.kron(eye, p['wv'].T),
        'wo_t': p['wfc'].T,
        'bo': p['bfc'].reshape(1, -1),
        'ln1_w': p['ln1_w'].reshape(1, -1),
        'ln1_b': p['ln1_b'].reshape(1, -1),
        'w1_t': p['w1'].T,
        'b1': p['b1'].reshape(1, -1),
        'w2_t': p['w2'].T,
        'b2': p['b2'].reshape(1, -1),
        'ln2_w': p['ln2_w'].reshape(1, -1),
        'ln2_b': p['ln2_b'].reshape(1, -1),
    }


def _build_attn_bias(mask, n, s, heads, embed_size):
    """(H*N*S, H*N*S) additive bias; row/col index = h*(N*S) + n*S + pos."""
    mask = jnp.broadcast_to(mask, (n, 1, s, s))
    m2 = mask[:, 0]                               # (N, S, S)
    r = heads * n * s
    idx = jnp.arange(r)
    h_idx = idx // (n * s)
    n_idx = (idx // s) % n
    p_idx = idx % s
    same_head = h_idx[:, None] == h_idx[None, :]
    same_batch = n_idx[:, None] == n_idx[None, :]
    user_keep = m2[n_idx[:, None], p_idx[:, None], p_idx[None, :]] != 0
    keep = same_head & same_batch & user_keep
    neg = jnp.float32(-1e20) / jnp.sqrt(jnp.float32(embed_size))
    return jnp.where(keep, jnp.float32(0.0), neg)


@functools.partial(jax.jit, static_argnames=("embed_size", "heads"))
def gpt2_forward_pallas(ids, mask, params, *, embed_size, heads):
    n, s = ids.shape
    ns = n * s
    head_dim = embed_size // heads
    vocab = params['embedding'].shape[0]

    attn_bias = _build_attn_bias(mask, n, s, heads, embed_size)

    x = _embedding_pallas(ids.reshape(ns, 1).astype(jnp.int32),
                          params['embedding'])                       # (NS, E)
    for layer in params['layers']:
        lp = _prepare_layer(layer, heads=heads, embed_size=embed_size)
        x = _transformer_block_pallas(x, attn_bias, lp,
                                      heads=heads, head_dim=head_dim)
    logits = _lm_head_pallas(x, params['w_out'].T,
                             params['b_out'].reshape(1, vocab))
    return logits.reshape(n, s, vocab)


# ----------------------------------------------------------------------------
# Pure-JAX reference (mirrors the PyTorch module) + parameter init
# ----------------------------------------------------------------------------
def _layer_norm_ref(x, w, b, eps=LN_EPS):
    mu = jnp.mean(x, axis=-1, keepdims=True)
    var = jnp.mean((x - mu) ** 2, axis=-1, keepdims=True)
    return (x - mu) / jnp.sqrt(var + eps) * w + b


def _mha_ref(values, keys, query, mask, p, *, heads, embed_size):
    head_dim = embed_size // heads
    n, ql, _ = query.shape
    vl, kl = values.shape[1], keys.shape[1]
    v = values.reshape(n, vl, heads, head_dim) @ p['wv'].T
    k = keys.reshape(n, kl, heads, head_dim) @ p['wk'].T
    q = query.reshape(n, ql, heads, head_dim) @ p['wq'].T
    energy = jnp.einsum('nqhd,nkhd->nhqk', q, k)
    energy = jnp.where(mask == 0.0, jnp.float32(-1e20), energy)
    attn = jax.nn.softmax(energy / (embed_size ** 0.5), axis=3)
    out = jnp.einsum('nhql,nlhd->nqhd', attn, v).reshape(n, ql, embed_size)
    return out @ p['wfc'].T + p['bfc']


def gpt2_reference(ids, mask, params, *, embed_size, heads):
    x = params['embedding'][ids]
    for p in params['layers']:
        a = _mha_ref(x, x, x, mask, p, heads=heads, embed_size=embed_size)
        h = _layer_norm_ref(a + x, p['ln1_w'], p['ln1_b'])
        f = jnp.maximum(h @ p['w1'].T + p['b1'], 0.0) @ p['w2'].T + p['b2']
        x = _layer_norm_ref(f + h, p['ln2_w'], p['ln2_b'])
    return x @ params['w_out'].T + params['b_out']


def _uniform(key, shape, fan_in):
    bound = 1.0 / (fan_in ** 0.5)
    return jax.random.uniform(key, shape, jnp.float32, -bound, bound)


def init_gpt2_params(key, *, vocab_size, embed_size, heads, num_layers):
    head_dim = embed_size // heads
    hidden = 4 * embed_size
    key_emb, key_wout, key_bout, *layer_keys = jax.random.split(key, 3 + num_layers)
    params = {
        'embedding': jax.random.normal(key_emb, (vocab_size, embed_size), jnp.float32),
        'w_out': _uniform(key_wout, (vocab_size, embed_size), embed_size),
        'b_out': _uniform(key_bout, (vocab_size,), embed_size),
        'layers': [],
    }
    for lk in layer_keys:
        ks = jax.random.split(lk, 13)
        params['layers'].append({
            'wq': _uniform(ks[0], (head_dim, head_dim), head_dim),
            'wk': _uniform(ks[1], (head_dim, head_dim), head_dim),
            'wv': _uniform(ks[2], (head_dim, head_dim), head_dim),
            'wfc': _uniform(ks[3], (embed_size, embed_size), embed_size),
            'bfc': _uniform(ks[4], (embed_size,), embed_size),
            'ln1_w': 1.0 + 0.1 * jax.random.normal(ks[5], (embed_size,), jnp.float32),
            'ln1_b': 0.1 * jax.random.normal(ks[6], (embed_size,), jnp.float32),
            'w1': _uniform(ks[7], (hidden, embed_size), embed_size),
            'b1': _uniform(ks[8], (hidden,), embed_size),
            'w2': _uniform(ks[9], (embed_size, hidden), hidden),
            'b2': _uniform(ks[10], (embed_size,), hidden),
            'ln2_w': 1.0 + 0.1 * jax.random.normal(ks[11], (embed_size,), jnp.float32),
            'ln2_b': 0.1 * jax.random.normal(ks[12], (embed_size,), jnp.float32),
        })
    return params


# ----------------------------------------------------------------------------
# Demo / correctness check
# ----------------------------------------------------------------------------
if __name__ == "__main__":
    key = jax.random.PRNGKey(0)
    k_ids, k_params = jax.random.split(key)

    ids = jax.random.randint(k_ids, (BATCH, SEQ_LEN), 0, VOCAB_SIZE,
                             dtype=jnp.int32)
    params = init_gpt2_params(k_params, vocab_size=VOCAB_SIZE,
                              embed_size=EMBED_SIZE, heads=HEADS,
                              num_layers=NUM_LAYERS)

    mask_ones = jnp.ones((BATCH, 1, SEQ_LEN, SEQ_LEN), jnp.float32)
    mask_causal = jnp.broadcast_to(
        jnp.tril(jnp.ones((SEQ_LEN, SEQ_LEN), jnp.float32))[None, None],
        (BATCH, 1, SEQ_LEN, SEQ_LEN))

    for mask in (mask_ones, mask_causal):
        out = gpt2_forward_pallas(ids, mask, params,
                                  embed_size=EMBED_SIZE, heads=HEADS)
        out = jax.block_until_ready(out)
        ref = gpt2_reference(ids, mask, params,
                             embed_size=EMBED_SIZE, heads=HEADS)
        assert out.shape == (BATCH, SEQ_LEN, VOCAB_SIZE)
        max_err = float(jnp.max(jnp.abs(out - ref)))
        # approx=True reciprocal in the softmax -> slightly looser tolerance.
        assert jnp.allclose(out, ref, atol=1e-2, rtol=1e-2), max_err

    print("KERNEL_OK")
</pallas_src>

<mosaic_0001>
module attributes {stable_mosaic.version = 11 : i64} {
  func.func @_embed_kernel(%arg0: i32, %arg1: memref<16x1xi32, #tpu.memory_space<vmem>>, %arg2: memref<512x32xf32, #tpu.memory_space<vmem>>, %arg3: memref<16x32xf32, #tpu.memory_space<vmem>>) attributes {dimension_semantics = [#tpu.dimension_semantics<arbitrary>], iteration_bounds = array<i64: 1>, scalar_prefetch = 0 : i64, scratch_operands = 0 : i64, tpu.core_type = #tpu.core_type<tc>, window_params = [{pipeline_mode = #tpu.pipeline_mode<synchronous>, transform_indices = @transform_0, window_bounds = array<i64: 16, 1>}, {pipeline_mode = #tpu.pipeline_mode<synchronous>, transform_indices = @transform_1, window_bounds = array<i64: 512, 32>}, {pipeline_mode = #tpu.pipeline_mode<synchronous>, transform_indices = @transform_2, window_bounds = array<i64: 16, 32>}]} {
    %c0 = arith.constant 0 : index
    %c0_0 = arith.constant 0 : index
    %0 = vector.load %arg1[%c0, %c0_0] : memref<16x1xi32, #tpu.memory_space<vmem>>, vector<16x1xi32>
    %1 = tpu.iota {dimensions = array<i32: 1>} : vector<16x512xi32>
    %2 = vector.broadcast %0 : vector<16x1xi32> to vector<16x512xi32>
    %3 = arith.cmpi eq, %1, %2 : vector<16x512xi32>
    %4 = arith.extui %3 : vector<16x512xi1> to vector<16x512xi32>
    %5 = arith.sitofp %4 : vector<16x512xi32> to vector<16x512xf32>
    %c0_1 = arith.constant 0 : index
    %c0_2 = arith.constant 0 : index
    %6 = vector.load %arg2[%c0_1, %c0_2] : memref<512x32xf32, #tpu.memory_space<vmem>>, vector<512x32xf32>
    %cst = arith.constant dense<0.000000e+00> : vector<16x32xf32>
    %7 = tpu.matmul %5, %6, %cst {dimension_numbers = #tpu.dot_dimension_numbers<[1], [0], [0], [1], [0, 0, 1, 1], [], []>} : vector<16x512xf32>, vector<512x32xf32>, vector<16x32xf32> -> vector<16x32xf32>
    %c0_3 = arith.constant 0 : index
    %c0_4 = arith.constant 0 : index
    %8 = vector.load %arg3[%c0_3, %c0_4] : memref<16x32xf32, #tpu.memory_space<vmem>>, vector<16x32xf32>
    tpu.vector_store %arg3[%c0_3, %c0_4], %7 {strides = array<i32>} : memref<16x32xf32, #tpu.memory_space<vmem>>, vector<16x32xf32>,
    return
  }
  func.func @transform_0(%arg0: i32) -> (i32, i32) {
    %c0_i32 = arith.constant 0 : i32
    %c0_i32_0 = arith.constant 0 : i32
    %c0_i32_1 = arith.constant 0 : i32
    return %c0_i32, %c0_i32_0 : i32, i32
  }
  func.func @transform_1(%arg0: i32) -> (i32, i32) {
    %c0_i32 = arith.constant 0 : i32
    %c0_i32_0 = arith.constant 0 : i32
    %c0_i32_1 = arith.constant 0 : i32
    return %c0_i32, %c0_i32_0 : i32, i32
  }
  func.func @transform_2(%arg0: i32) -> (i32, i32) {
    %c0_i32 = arith.constant 0 : i32
    %c0_i32_0 = arith.constant 0 : i32
    %c0_i32_1 = arith.constant 0 : i32
    return %c0_i32, %c0_i32_0 : i32, i32
  }
}

module attributes {stable_mosaic.version = 11 : i64} {
  func.func @_transformer_block_kernel(%arg0: i32, %arg1: memref<16x32xf32, #tpu.memory_space<vmem>>, %arg2: memref<64x64xf32, #tpu.memory_space<vmem>>, %arg3: memref<32x32xf32, #tpu.memory_space<vmem>>, %arg4: memref<32x32xf32, #tpu.memory_space<vmem>>, %arg5: memref<32x32xf32, #tpu.memory_space<vmem>>, %arg6: memref<32x32xf32, #tpu.memory_space<vmem>>, %arg7: memref<1x32xf32, #tpu.memory_space<vmem>>, %arg8: memref<1x32xf32, #tpu.memory_space<vmem>>, %arg9: memref<1x32xf32, #tpu.memory_space<vmem>>, %arg10: memref<32x128xf32, #tpu.memory_space<vmem>>, %arg11: memref<1x128xf32, #tpu.memory_space<vmem>>, %arg12: memref<128x32xf32, #tpu.memory_space<vmem>>, %arg13: memref<1x32xf32, #tpu.memory_space<vmem>>, %arg14: memref<1x32xf32, #tpu.memory_space<vmem>>, %arg15: memref<1x32xf32, #tpu.memory_space<vmem>>, %arg16: memref<16x32xf32, #tpu.memory_space<vmem>>) attributes {dimension_semantics = [#tpu.dimension_semantics<arbitrary>], iteration_bounds = array<i64: 1>, scalar_prefetch = 0 : i64, scratch_operands = 0 : i64, tpu.core_type = #tpu.core_type<tc>, window_params = [{pipeline_mode = #tpu.pipeline_mode<synchronous>, transform_indices = @transform_0, window_bounds = array<i64: 16, 32>}, {pipeline_mode = #tpu.pipeline_mode<synchronous>, transform_indices = @transform_1, window_bounds = array<i64: 64, 64>}, {pipeline_mode = #tpu.pipeline_mode<synchronous>, transform_indices = @transform_2, window_bounds = array<i64: 32, 32>}, {pipeline_mode = #tpu.pipeline_mode<synchronous>, transform_indices = @transform_3, window_bounds = array<i64: 32, 32>}, {pipeline_mode = #tpu.pipeline_mode<synchronous>, transform_indices = @transform_4, window_bounds = array<i64: 32, 32>}, {pipeline_mode = #tpu.pipeline_mode<synchronous>, transform_indices = @transform_5, window_bounds = array<i64: 32, 32>}, {pipeline_mode = #tpu.pipeline_mode<synchronous>, transform_indices = @transform_6, window_bounds = array<i64: 1, 32>}, {pipeline_mode = #tpu.pipeline_mode<synchronous>, transform_indices = @transform_7, window_bounds = array<i64: 1, 32>}, {pipeline_mode = #tpu.pipeline_mode<synchronous>, transform_indices = @transform_8, window_bounds = array<i64: 1, 32>}, {pipeline_mode = #tpu.pipeline_mode<synchronous>, transform_indices = @transform_9, window_bounds = array<i64: 32, 128>}, {pipeline_mode = #tpu.pipeline_mode<synchronous>, transform_indices = @transform_10, window_bounds = array<i64: 1, 128>}, {pipeline_mode = #tpu.pipeline_mode<synchronous>, transform_indices = @transform_11, window_bounds = array<i64: 128, 32>}, {pipeline_mode = #tpu.pipeline_mode<synchronous>, transform_indices = @transform_12, window_bounds = array<i64: 1, 32>}, {pipeline_mode = #tpu.pipeline_mode<synchronous>, transform_indices = @transform_13, window_bounds = array<i64: 1, 32>}, {pipeline_mode = #tpu.pipeline_mode<synchronous>, transform_indices = @transform_14, window_bounds = array<i64: 1, 32>}, {pipeline_mode = #tpu.pipeline_mode<synchronous>, transform_indices = @transform_15, window_bounds = array<i64: 16, 32>}]} {
    %c0 = arith.constant 0 : index
    %c0_0 = arith.constant 0 : index
    %0 = vector.load %arg1[%c0, %c0_0] : memref<16x32xf32, #tpu.memory_space<vmem>>, vector<16x32xf32>
    %c0_1 = arith.constant 0 : index
    %c0_2 = arith.constant 0 : index
    %1 = vector.load %arg3[%c0_1, %c0_2] : memref<32x32xf32, #tpu.memory_space<vmem>>, vector<32x32xf32>
    %cst = arith.constant dense<0.000000e+00> : vector<16x32xf32>
    %2 = tpu.matmul %0, %1, %cst {dimension_numbers = #tpu.dot_dimension_numbers<[1], [0], [0], [1], [0, 0, 1, 1], [], []>} : vector<16x32xf32>, vector<32x32xf32>, vector<16x32xf32> -> vector<16x32xf32>
    %c0_3 = arith.constant 0 : index
    %c0_4 = arith.constant 0 : index
    %3 = vector.load %arg4[%c0_3, %c0_4] : memref<32x32xf32, #tpu.memory_space<vmem>>, vector<32x32xf32>
    %cst_5 = arith.constant dense<0.000000e+00> : vector<16x32xf32>
    %4 = tpu.matmul %0, %3, %cst_5 {dimension_numbers = #tpu.dot_dimension_numbers<[1], [0], [0], [1], [0, 0, 1, 1], [], []>} : vector<16x32xf32>, vector<32x32xf32>, vector<16x32xf32> -> vector<16x32xf32>
    %c0_6 = arith.constant 0 : index
    %c0_7 = arith.constant 0 : index
    %5 = vector.load %arg5[%c0_6, %c0_7] : memref<32x32xf32, #tpu.memory_space<vmem>>, vector<32x32xf32>
    %cst_8 = arith.constant dense<0.000000e+00> : vector<16x32xf32>
    %6 = tpu.matmul %0, %5, %cst_8 {dimension_numbers = #tpu.dot_dimension_numbers<[1], [0], [0], [1], [0, 0, 1, 1], [], []>} : vector<16x32xf32>, vector<32x32xf32>, vector<16x32xf32> -> vector<16x32xf32>
    %7 = vector.extract_strided_slice %2 {offsets = [0, 0], sizes = [16, 8], strides = [1, 1]} : vector<16x32xf32> to vector<16x8xf32>
    %8 = vector.extract_strided_slice %2 {offsets = [0, 8], sizes = [16, 8], strides = [1, 1]} : vector<16x32xf32> to vector<16x8xf32>
    %9 = vector.extract_strided_slice %2 {offsets = [0, 16], sizes = [16, 8], strides = [1, 1]} : vector<16x32xf32> to vector<16x8xf32>
    %10 = vector.extract_strided_slice %2 {offsets = [0, 24], sizes = [16, 8], strides = [1, 1]} : vector<16x32xf32> to vector<16x8xf32>
    %11 = tpu.concatenate %7, %8, %9, %10 in 0 : vector<16x8xf32>, vector<16x8xf32>, vector<16x8xf32>, vector<16x8xf32> -> vector<64x8xf32>
    %12 = vector.extract_strided_slice %4 {offsets = [0, 0], sizes = [16, 8], strides = [1, 1]} : vector<16x32xf32> to vector<16x8xf32>
    %13 = vector.extract_strided_slice %4 {offsets = [0, 8], sizes = [16, 8], strides = [1, 1]} : vector<16x32xf32> to vector<16x8xf32>
    %14 = vector.extract_strided_slice %4 {offsets = [0, 16], sizes = [16, 8], strides = [1, 1]} : vector<16x32xf32> to vector<16x8xf32>
    %15 = vector.extract_strided_slice %4 {offsets = [0, 24], sizes = [16, 8], strides = [1, 1]} : vector<16x32xf32> to vector<16x8xf32>
    %16 = tpu.concatenate %12, %13, %14, %15 in 0 : vector<16x8xf32>, vector<16x8xf32>, vector<16x8xf32>, vector<16x8xf32> -> vector<64x8xf32>
    %17 = vector.extract_strided_slice %6 {offsets = [0, 0], sizes = [16, 8], strides = [1, 1]} : vector<16x32xf32> to vector<16x8xf32>
    %18 = vector.extract_strided_slice %6 {offsets = [0, 8], sizes = [16, 8], strides = [1, 1]} : vector<16x32xf32> to vector<16x8xf32>
    %19 = vector.extract_strided_slice %6 {offsets = [0, 16], sizes = [16, 8], strides = [1, 1]} : vector<16x32xf32> to vector<16x8xf32>
    %20 = vector.extract_strided_slice %6 {offsets = [0, 24], sizes = [16, 8], strides = [1, 1]} : vector<16x32xf32> to vector<16x8xf32>
    %21 = tpu.concatenate %17, %18, %19, %20 in 0 : vector<16x8xf32>, vector<16x8xf32>, vector<16x8xf32>, vector<16x8xf32> -> vector<64x8xf32>
    %cst_9 = arith.constant dense<0.000000e+00> : vector<64x64xf32>
    %22 = tpu.matmul %11, %16, %cst_9 {dimension_numbers = #tpu.dot_dimension_numbers<[1], [1], [0], [0], [0, 0, 1, 0], [], []>} : vector<64x8xf32>, vector<64x8xf32>, vector<64x64xf32> -> vector<64x64xf32>
    %c0_10 = arith.constant 0 : index
    %c0_11 = arith.constant 0 : index
    %23 = vector.load %arg2[%c0_10, %c0_11] : memref<64x64xf32, #tpu.memory_space<vmem>>, vector<64x64xf32>
    %24 = arith.addf %22, %23 : vector<64x64xf32>
    %cst_12 = arith.constant dense<0xFF800000> : vector<64xf32>
    %25 = vector.multi_reduction <maximumf>, %24, %cst_12 [1] : vector<64x64xf32> to vector<64xf32>
    %26 = vector.shape_cast %25 : vector<64xf32> to vector<64x1xf32>
    %27 = vector.broadcast %26 : vector<64x1xf32> to vector<64x64xf32>
    %28 = arith.subf %24, %27 : vector<64x64xf32>
    %29 = math.exp %28 : vector<64x64xf32>
    %cst_13 = arith.constant dense<0.000000e+00> : vector<64xf32>
    %30 = vector.multi_reduction <add>, %29, %cst_13 [1] : vector<64x64xf32> to vector<64xf32>
    %31 = vector.shape_cast %30 : vector<64xf32> to vector<64x1xf32>
    %32 = tpu.reciprocal %31 {approx = true} : vector<64x1xf32> -> vector<64x1xf32>
    %33 = vector.broadcast %32 : vector<64x1xf32> to vector<64x64xf32>
    %34 = arith.mulf %29, %33 : vector<64x64xf32>
    %cst_14 = arith.constant dense<0.000000e+00> : vector<64x8xf32>
    %35 = tpu.matmul %34, %21, %cst_14 {dimension_numbers = #tpu.dot_dimension_numbers<[1], [0], [0], [1], [0, 0, 1, 1], [], []>} : vector<64x64xf32>, vector<64x8xf32>, vector<64x8xf32> -> vector<64x8xf32>
    %36 = vector.extract_strided_slice %35 {offsets = [0, 0], sizes = [16, 8], strides = [1, 1]} : vector<64x8xf32> to vector<16x8xf32>
    %37 = vector.extract_strided_slice %35 {offsets = [16, 0], sizes = [16, 8], strides = [1, 1]} : vector<64x8xf32> to vector<16x8xf32>
    %38 = vector.extract_strided_slice %35 {offsets = [32, 0], sizes = [16, 8], strides = [1, 1]} : vector<64x8xf32> to vector<16x8xf32>
    %39 = vector.extract_strided_slice %35 {offsets = [48, 0], sizes = [16, 8], strides = [1, 1]} : vector<64x8xf32> to vector<16x8xf32>
    %40 = tpu.concatenate %36, %37, %38, %39 in 1 : vector<16x8xf32>, vector<16x8xf32>, vector<16x8xf32>, vector<16x8xf32> -> vector<16x32xf32>
    %c0_15 = arith.constant 0 : index
    %c0_16 = arith.constant 0 : index
    %41 = vector.load %arg6[%c0_15, %c0_16] : memref<32x32xf32, #tpu.memory_space<vmem>>, vector<32x32xf32>
    %cst_17 = arith.constant dense<0.000000e+00> : vector<16x32xf32>
    %42 = tpu.matmul %40, %41, %cst_17 {dimension_numbers = #tpu.dot_dimension_numbers<[1], [0], [0], [1], [0, 0, 1, 1], [], []>} : vector<16x32xf32>, vector<32x32xf32>, vector<16x32xf32> -> vector<16x32xf32>
    %c0_18 = arith.constant 0 : index
    %c0_19 = arith.constant 0 : index
    %43 = vector.load %arg7[%c0_18, %c0_19] : memref<1x32xf32, #tpu.memory_space<vmem>>, vector<1x32xf32>
    %44 = vector.broadcast %43 : vector<1x32xf32> to vector<16x32xf32>
    %45 = arith.addf %42, %44 : vector<16x32xf32>
    %46 = arith.addf %45, %0 : vector<16x32xf32>
    %c0_20 = arith.constant 0 : index
    %c0_21 = arith.constant 0 : index
    %47 = vector.load %arg8[%c0_20, %c0_21] : memref<1x32xf32, #tpu.memory_space<vmem>>, vector<1x32xf32>
    %c0_22 = arith.constant 0 : index
    %c0_23 = arith.constant 0 : index
    %48 = vector.load %arg9[%c0_22, %c0_23] : memref<1x32xf32, #tpu.memory_space<vmem>>, vector<1x32xf32>
    %cst_24 = arith.constant dense<0.000000e+00> : vector<16xf32>
    %49 = vector.multi_reduction <add>, %46, %cst_24 [1] : vector<16x32xf32> to vector<16xf32>
    %50 = vector.shape_cast %49 : vector<16xf32> to vector<16x1xf32>
    %cst_25 = arith.constant 3.200000e+01 : f32
    %51 = vector.broadcast %cst_25 : f32 to vector<16x1xf32>
    %52 = arith.divf %50, %51 : vector<16x1xf32>
    %53 = vector.broadcast %52 : vector<16x1xf32> to vector<16x32xf32>
    %54 = arith.subf %46, %53 : vector<16x32xf32>
    %55 = arith.mulf %54, %54 : vector<16x32xf32>
    %cst_26 = arith.constant dense<0.000000e+00> : vector<16xf32>
    %56 = vector.multi_reduction <add>, %55, %cst_26 [1] : vector<16x32xf32> to vector<16xf32>
    %57 = vector.shape_cast %56 : vector<16xf32> to vector<16x1xf32>
    %cst_27 = arith.constant 3.200000e+01 : f32
    %58 = vector.broadcast %cst_27 : f32 to vector<16x1xf32>
    %59 = arith.divf %57, %58 : vector<16x1xf32>
    %cst_28 = arith.constant 9.99999974E-6 : f32
    %60 = vector.broadcast %cst_28 : f32 to vector<16x1xf32>
    %61 = arith.addf %59, %60 : vector<16x1xf32>
    %62 = math.rsqrt %61 : vector<16x1xf32>
    %63 = vector.broadcast %62 : vector<16x1xf32> to vector<16x32xf32>
    %64 = arith.mulf %54, %63 : vector<16x32xf32>
    %65 = vector.broadcast %47 : vector<1x32xf32> to vector<16x32xf32>
    %66 = arith.mulf %64, %65 : vector<16x32xf32>
    %67 = vector.broadcast %48 : vector<1x32xf32> to vector<16x32xf32>
    %68 = arith.addf %66, %67 : vector<16x32xf32>
    %c0_29 = arith.constant 0 : index
    %c0_30 = arith.constant 0 : index
    %69 = vector.load %arg10[%c0_29, %c0_30] : memref<32x128xf32, #tpu.memory_space<vmem>>, vector<32x128xf32>
    %cst_31 = arith.constant dense<0.000000e+00> : vector<16x128xf32>
    %70 = tpu.matmul %68, %69, %cst_31 {dimension_numbers = #tpu.dot_dimension_numbers<[1], [0], [0], [1], [0, 0, 1, 1], [], []>} : vector<16x32xf32>, vector<32x128xf32>, vector<16x128xf32> -> vector<16x128xf32>
    %c0_32 = arith.constant 0 : index
    %c0_33 = arith.constant 0 : index
    %71 = vector.load %arg11[%c0_32, %c0_33] : memref<1x128xf32, #tpu.memory_space<vmem>>, vector<1x128xf32>
    %72 = vector.broadcast %71 : vector<1x128xf32> to vector<16x128xf32>
    %73 = arith.addf %70, %72 : vector<16x128xf32>
    %cst_34 = arith.constant 0.000000e+00 : f32
    %74 = vector.broadcast %cst_34 : f32 to vector<16x128xf32>
    %75 = arith.maximumf %73, %74 : vector<16x128xf32>
    %c0_35 = arith.constant 0 : index
    %c0_36 = arith.constant 0 : index
    %76 = vector.load %arg12[%c0_35, %c0_36] : memref<128x32xf32, #tpu.memory_space<vmem>>, vector<128x32xf32>
    %cst_37 = arith.constant dense<0.000000e+00> : vector<16x32xf32>
    %77 = tpu.matmul %75, %76, %cst_37 {dimension_numbers = #tpu.dot_dimension_numbers<[1], [0], [0], [1], [0, 0, 1, 1], [], []>} : vector<16x128xf32>, vector<128x32xf32>, vector<16x32xf32> -> vector<16x32xf32>
    %c0_38 = arith.constant 0 : index
    %c0_39 = arith.constant 0 : index
    %78 = vector.load %arg13[%c0_38, %c0_39] : memref<1x32xf32, #tpu.memory_space<vmem>>, vector<1x32xf32>
    %79 = vector.broadcast %78 : vector<1x32xf32> to vector<16x32xf32>
    %80 = arith.addf %77, %79 : vector<16x32xf32>
    %81 = arith.addf %80, %68 : vector<16x32xf32>
    %c0_40 = arith.constant 0 : index
    %c0_41 = arith.constant 0 : index
    %82 = vector.load %arg14[%c0_40, %c0_41] : memref<1x32xf32, #tpu.memory_space<vmem>>, vector<1x32xf32>
    %c0_42 = arith.constant 0 : index
    %c0_43 = arith.constant 0 : index
    %83 = vector.load %arg15[%c0_42, %c0_43] : memref<1x32xf32, #tpu.memory_space<vmem>>, vector<1x32xf32>
    %cst_44 = arith.constant dense<0.000000e+00> : vector<16xf32>
    %84 = vector.multi_reduction <add>, %81, %cst_44 [1] : vector<16x32xf32> to vector<16xf32>
    %85 = vector.shape_cast %84 : vector<16xf32> to vector<16x1xf32>
    %cst_45 = arith.constant 3.200000e+01 : f32
    %86 = vector.broadcast %cst_45 : f32 to vector<16x1xf32>
    %87 = arith.divf %85, %86 : vector<16x1xf32>
    %88 = vector.broadcast %87 : vector<16x1xf32> to vector<16x32xf32>
    %89 = arith.subf %81, %88 : vector<16x32xf32>
    %90 = arith.mulf %89, %89 : vector<16x32xf32>
    %cst_46 = arith.constant dense<0.000000e+00> : vector<16xf32>
    %91 = vector.multi_reduction <add>, %90, %cst_46 [1] : vector<16x32xf32> to vector<16xf32>
    %92 = vector.shape_cast %91 : vector<16xf32> to vector<16x1xf32>
    %cst_47 = arith.constant 3.200000e+01 : f32
    %93 = vector.broadcast %cst_47 : f32 to vector<16x1xf32>
    %94 = arith.divf %92, %93 : vector<16x1xf32>
    %cst_48 = arith.constant 9.99999974E-6 : f32
    %95 = vector.broadcast %cst_48 : f32 to vector<16x1xf32>
    %96 = arith.addf %94, %95 : vector<16x1xf32>
    %97 = math.rsqrt %96 : vector<16x1xf32>
    %98 = vector.broadcast %97 : vector<16x1xf32> to vector<16x32xf32>
    %99 = arith.mulf %89, %98 : vector<16x32xf32>
    %100 = vector.broadcast %82 : vector<1x32xf32> to vector<16x32xf32>
    %101 = arith.mulf %99, %100 : vector<16x32xf32>
    %102 = vector.broadcast %83 : vector<1x32xf32> to vector<16x32xf32>
    %103 = arith.addf %101, %102 : vector<16x32xf32>
    %c0_49 = arith.constant 0 : index
    %c0_50 = arith.constant 0 : index
    %104 = vector.load %arg16[%c0_49, %c0_50] : memref<16x32xf32, #tpu.memory_space<vmem>>, vector<16x32xf32>
    tpu.vector_store %arg16[%c0_49, %c0_50], %103 {strides = array<i32>} : memref<16x32xf32, #tpu.memory_space<vmem>>, vector<16x32xf32>,
    return
  }
  func.func @transform_0(%arg0: i32) -> (i32, i32) {
    %c0_i32 = arith.constant 0 : i32
    %c0_i32_0 = arith.constant 0 : i32
    %c0_i32_1 = arith.constant 0 : i32
    return %c0_i32, %c0_i32_0 : i32, i32
  }
  func.func @transform_1(%arg0: i32) -> (i32, i32) {
    %c0_i32 = arith.constant 0 : i32
    %c0_i32_0 = arith.constant 0 : i32
    %c0_i32_1 = arith.constant 0 : i32
    return %c0_i32, %c0_i32_0 : i32, i32
  }
  func.func @transform_2(%arg0: i32) -> (i32, i32) {
    %c0_i32 = arith.constant 0 : i32
    %c0_i32_0 = arith.constant 0 : i32
    %c0_i32_1 = arith.constant 0 : i32
    return %c0_i32, %c0_i32_0 : i32, i32
  }
  func.func @transform_3(%arg0: i32) -> (i32, i32) {
    %c0_i32 = arith.constant 0 : i32
    %c0_i32_0 = arith.constant 0 : i32
    %c0_i32_1 = arith.constant 0 : i32
    return %c0_i32, %c0_i32_0 : i32, i32
  }
  func.func @transform_4(%arg0: i32) -> (i32, i32) {
    %c0_i32 = arith.constant 0 : i32
    %c0_i32_0 = arith.constant 0 : i32
    %c0_i32_1 = arith.constant 0 : i32
    return %c0_i32, %c0_i32_0 : i32, i32
  }
  func.func @transform_5(%arg0: i32) -> (i32, i32) {
    %c0_i32 = arith.constant 0 : i32
    %c0_i32_0 = arith.constant 0 : i32
    %c0_i32_1 = arith.constant 0 : i32
    return %c0_i32, %c0_i32_0 : i32, i32
  }
  func.func @transform_6(%arg0: i32) -> (i32, i32) {
    %c0_i32 = arith.constant 0 : i32
    %c0_i32_0 = arith.constant 0 : i32
    %c0_i32_1 = arith.constant 0 : i32
    return %c0_i32, %c0_i32_0 : i32, i32
  }
  func.func @transform_7(%arg0: i32) -> (i32, i32) {
    %c0_i32 = arith.constant 0 : i32
    %c0_i32_0 = arith.constant 0 : i32
    %c0_i32_1 = arith.constant 0 : i32
    return %c0_i32, %c0_i32_0 : i32, i32
  }
  func.func @transform_8(%arg0: i32) -> (i32, i32) {
    %c0_i32 = arith.constant 0 : i32
    %c0_i32_0 = arith.constant 0 : i32
    %c0_i32_1 = arith.constant 0 : i32
    return %c0_i32, %c0_i32_0 : i32, i32
  }
  func.func @transform_9(%arg0: i32) -> (i32, i32) {
    %c0_i32 = arith.constant 0 : i32
    %c0_i32_0 = arith.constant 0 : i32
    %c0_i32_1 = arith.constant 0 : i32
    return %c0_i32, %c0_i32_0 : i32, i32
  }
  func.func @transform_10(%arg0: i32) -> (i32, i32) {
    %c0_i32 = arith.constant 0 : i32
    %c0_i32_0 = arith.constant 0 : i32
    %c0_i32_1 = arith.constant 0 : i32
    return %c0_i32, %c0_i32_0 : i32, i32
  }
  func.func @transform_11(%arg0: i32) -> (i32, i32) {
    %c0_i32 = arith.constant 0 : i32
    %c0_i32_0 = arith.constant 0 : i32
    %c0_i32_1 = arith.constant 0 : i32
    return %c0_i32, %c0_i32_0 : i32, i32
  }
  func.func @transform_12(%arg0: i32) -> (i32, i32) {
    %c0_i32 = arith.constant 0 : i32
    %c0_i32_0 = arith.constant 0 : i32
    %c0_i32_1 = arith.constant 0 : i32
    return %c0_i32, %c0_i32_0 : i32, i32
  }
  func.func @transform_13(%arg0: i32) -> (i32, i32) {
    %c0_i32 = arith.constant 0 : i32
    %c0_i32_0 = arith.constant 0 : i32
    %c0_i32_1 = arith.constant 0 : i32
    return %c0_i32, %c0_i32_0 : i32, i32
  }
  func.func @transform_14(%arg0: i32) -> (i32, i32) {
    %c0_i32 = arith.constant 0 : i32
    %c0_i32_0 = arith.constant 0 : i32
    %c0_i32_1 = arith.constant 0 : i32
    return %c0_i32, %c0_i32_0 : i32, i32
  }
  func.func @transform_15(%arg0: i32) -> (i32, i32) {
    %c0_i32 = arith.constant 0 : i32
    %c0_i32_0 = arith.constant 0 : i32
    %c0_i32_1 = arith.constant 0 : i32
    return %c0_i32, %c0_i32_0 : i32, i32
  }
}

module attributes {stable_mosaic.version = 11 : i64} {
  func.func @_lm_head_kernel(%arg0: i32, %arg1: memref<16x32xf32, #tpu.memory_space<vmem>>, %arg2: memref<32x512xf32, #tpu.memory_space<vmem>>, %arg3: memref<1x512xf32, #tpu.memory_space<vmem>>, %arg4: memref<16x512xf32, #tpu.memory_space<vmem>>) attributes {dimension_semantics = [#tpu.dimension_semantics<arbitrary>], iteration_bounds = array<i64: 1>, scalar_prefetch = 0 : i64, scratch_operands = 0 : i64, tpu.core_type = #tpu.core_type<tc>, window_params = [{pipeline_mode = #tpu.pipeline_mode<synchronous>, transform_indices = @transform_0, window_bounds = array<i64: 16, 32>}, {pipeline_mode = #tpu.pipeline_mode<synchronous>, transform_indices = @transform_1, window_bounds = array<i64: 32, 512>}, {pipeline_mode = #tpu.pipeline_mode<synchronous>, transform_indices = @transform_2, window_bounds = array<i64: 1, 512>}, {pipeline_mode = #tpu.pipeline_mode<synchronous>, transform_indices = @transform_3, window_bounds = array<i64: 16, 512>}]} {
    %c0 = arith.constant 0 : index
    %c0_0 = arith.constant 0 : index
    %0 = vector.load %arg1[%c0, %c0_0] : memref<16x32xf32, #tpu.memory_space<vmem>>, vector<16x32xf32>
    %c0_1 = arith.constant 0 : index
    %c0_2 = arith.constant 0 : index
    %1 = vector.load %arg2[%c0_1, %c0_2] : memref<32x512xf32, #tpu.memory_space<vmem>>, vector<32x512xf32>
    %cst = arith.constant dense<0.000000e+00> : vector<16x512xf32>
    %2 = tpu.matmul %0, %1, %cst {dimension_numbers = #tpu.dot_dimension_numbers<[1], [0], [0], [1], [0, 0, 1, 1], [], []>} : vector<16x32xf32>, vector<32x512xf32>, vector<16x512xf32> -> vector<16x512xf32>
    %c0_3 = arith.constant 0 : index
    %c0_4 = arith.constant 0 : index
    %3 = vector.load %arg3[%c0_3, %c0_4] : memref<1x512xf32, #tpu.memory_space<vmem>>, vector<1x512xf32>
    %4 = vector.broadcast %3 : vector<1x512xf32> to vector<16x512xf32>
    %5 = arith.addf %2, %4 : vector<16x512xf32>
    %c0_5 = arith.constant 0 : index
    %c0_6 = arith.constant 0 : index
    %6 = vector.load %arg4[%c0_5, %c0_6] : memref<16x512xf32, #tpu.memory_space<vmem>>, vector<16x512xf32>
    tpu.vector_store %arg4[%c0_5, %c0_6], %5 {strides = array<i32>} : memref<16x512xf32, #tpu.memory_space<vmem>>, vector<16x512xf32>,
    return
  }
  func.func @transform_0(%arg0: i32) -> (i32, i32) {
    %c0_i32 = arith.constant 0 : i32
    %c0_i32_0 = arith.constant 0 : i32
    %c0_i32_1 = arith.constant 0 : i32
    return %c0_i32, %c0_i32_0 : i32, i32
  }
  func.func @transform_1(%arg0: i32) -> (i32, i32) {
    %c0_i32 = arith.constant 0 : i32
    %c0_i32_0 = arith.constant 0 : i32
    %c0_i32_1 = arith.constant 0 : i32
    return %c0_i32, %c0_i32_0 : i32, i32
  }
  func.func @transform_2(%arg0: i32) -> (i32, i32) {
    %c0_i32 = arith.constant 0 : i32
    %c0_i32_0 = arith.constant 0 : i32
    %c0_i32_1 = arith.constant 0 : i32
    return %c0_i32, %c0_i32_0 : i32, i32
  }
  func.func @transform_3(%arg0: i32) -> (i32, i32) {
    %c0_i32 = arith.constant 0 : i32
    %c0_i32_0 = arith.constant 0 : i32
    %c0_i32_1 = arith.constant 0 : i32
    return %c0_i32, %c0_i32_0 : i32, i32
  }
}

</mosaic_0001>

<bundles_post_ra>
// kernel: gpt2_forward_pallas.4
= control target key start
LH: loop header
LB: loop body
LE: loop exit
PB: predicated region body
PF: predicated region fallthrough
CT: control target
= control target key end

     0   :  { %v230_v0 = vmov 0   ;;  %vm204_vm8 = vcmask 261120   ;;  %s451_s0 = inlined_call_operand.vmem [shape: s32[16,1], index: 0, kind: input, shape index: {}]   ;;  %s452_s1 = inlined_call_operand.vmem [shape: f32[512,32], index: 1, kind: input, shape index: {}]   ;;  %s453_s2 = inlined_call_operand.vmem [shape: f32[16,32], index: 2, kind: output, shape index: {}]  }
   0x1   :  { %229 = vset.pattern.permute.xlu0 %v230_v0  ;;  %v11_v1 = vld [vmem:[%s451_s0] sm:$0xff]  ;;  %v63_v2 = vld [vmem:[%s452_s1 + $0x78] sm:$0xff]  ;;  %v62_v6 = vld [vmem:[%s452_s1 + $0x70] sm:$0xff] }
   0x2   :  { %19 = vperm.xlu0 %229, %v11_v1   ;;  %112 = vmatpush.msra.mxu0 %v63_v2  ;;  %v79_v3 = vld [vmem:[%s452_s1 + $0xf8] sm:$0xff]  ;;  %v78_v7 = vld [vmem:[%s452_s1 + $0xf0] sm:$0xff]  ;;  %v61_v10 = vld [vmem:[%s452_s1 + $0x68] sm:$0xff] }
   0x3   :  { %v95_v4 = vld [vmem:[%s452_s1 + $0x178] sm:$0xff]  ;;  %135 = vmatpush.msra.mxu1 %v79_v3  ;;  %v94_v8 = vld [vmem:[%s452_s1 + $0x170] sm:$0xff]  ;;  %v77_v11 = vld [vmem:[%s452_s1 + $0xe8] sm:$0xff]  ;;  %v13_v3 = vlaneseq }
   0x4   :  { %v111_v5 = vld [vmem:[%s452_s1 + $0x1f8] sm:$0xff]  ;;  %158 = vmatpush.msra.mxu2 %v95_v4  ;;  %113 = vmatpush.msra.mxu0 %v62_v6  ;;  %v110_v9 = vld [vmem:[%s452_s1 + $0x1f0] sm:$0xff]  ;;  %v93_v12 = vld [vmem:[%s452_s1 + $0x168] sm:$0xff] }
   0x5   :  { %181 = vmatpush.msra.mxu3 %v111_v5  ;;  %136 = vmatpush.msra.mxu1 %v78_v7  ;;  %v109_v13 = vld [vmem:[%s452_s1 + $0x1e8] sm:$0xff]  ;;  %v60_v14 = vld [vmem:[%s452_s1 + $0x60] sm:$0xff]  ;;  %v59_v19 = vld [vmem:[%s452_s1 + $0x58] sm:$0xff]  ;;  %v14_v4 = vand.u32 127, %v13_v3 }
   0x6   :  { %159 = vmatpush.msra.mxu2 %v94_v8  ;;  %114 = vmatpush.msra.mxu0 %v61_v10  ;;  %v76_v15 = vld [vmem:[%s452_s1 + $0xe0] sm:$0xff]  ;;  %v12_v17 = vld [vmem:[%s451_s0 + $0x8] sm:$0xff]  ;;  %v75_v20 = vld [vmem:[%s452_s1 + $0xd8] sm:$0xff] }
   0x7   :  { %182 = vmatpush.msra.mxu3 %v110_v9  ;;  %v92_v16 = vld [vmem:[%s452_s1 + $0x160] sm:$0xff]  ;;  %137 = vmatpush.msra.mxu1 %v77_v11  ;;  %v91_v21 = vld [vmem:[%s452_s1 + $0x158] sm:$0xff]  ;;  %v58_v23 = vld [vmem:[%s452_s1 + $0x50] sm:$0xff]  ;;  %v15_v5 = vadd.s32 128, %v14_v4  ;;  %v16_v6 = vadd.s32 256, %v14_v4  ;;  %v17_v7 = vadd.s32 384, %v14_v4 }
   0x8   :  { %160 = vmatpush.msra.mxu2 %v93_v12  ;;  %v108_v18 = vld [vmem:[%s452_s1 + $0x1e0] sm:$0xff]  ;;  %115 = vmatpush.msra.mxu0 %v60_v14  ;;  %v107_v22 = vld [vmem:[%s452_s1 + $0x1d8] sm:$0xff]  ;;  %v74_v24 = vld [vmem:[%s452_s1 + $0xd0] sm:$0xff]  ;;  %v231_v9 = vmov 1.0  }
   0x9   :  { %183 = vmatpush.msra.mxu3 %v109_v13  ;;  %138 = vmatpush.msra.mxu1 %v76_v15  ;;  %v90_v25 = vld [vmem:[%s452_s1 + $0x150] sm:$0xff]  ;;  %v57_v27 = vld [vmem:[%s452_s1 + $0x48] sm:$0xff]  ;;  %v56_v31 = vld [vmem:[%s452_s1 + $0x40] sm:$0xff] }
   0xa   :  { %161 = vmatpush.msra.mxu2 %v92_v16  ;;  %22 = vperm.xlu0 %229, %v12_v17   ;;  %v106_v26 = vld [vmem:[%s452_s1 + $0x1d0] sm:$0xff]  ;;  %v73_v28 = vld [vmem:[%s452_s1 + $0xc8] sm:$0xff]  ;;  %v72_v32 = vld [vmem:[%s452_s1 + $0xc0] sm:$0xff] }
   0xb   :  { %184 = vmatpush.msra.mxu3 %v108_v18  ;;  %116 = vmatpush.msra.mxu0 %v59_v19  ;;  %v89_v29 = vld [vmem:[%s452_s1 + $0x148] sm:$0xff]  ;;  %v88_v33 = vld [vmem:[%s452_s1 + $0x140] sm:$0xff]  ;;  %v55_v35 = vld [vmem:[%s452_s1 + $0x38] sm:$0xff] }
   0xc   :  { %139 = vmatpush.msra.mxu1 %v75_v20  ;;  %162 = vmatpush.msra.mxu2 %v91_v21  ;;  %v105_v30 = vld [vmem:[%s452_s1 + $0x1c8] sm:$0xff]  ;;  %v104_v34 = vld [vmem:[%s452_s1 + $0x1c0] sm:$0xff]  ;;  %v71_v36 = vld [vmem:[%s452_s1 + $0xb8] sm:$0xff] }
   0xd   :  { %185 = vmatpush.msra.mxu3 %v107_v22  ;;  %117 = vmatpush.msra.mxu0 %v58_v23  ;;  %v87_v37 = vld [vmem:[%s452_s1 + $0x138] sm:$0xff]  ;;  %v54_v39 = vld [vmem:[%s452_s1 + $0x30] sm:$0xff]  ;;  %v53_v43 = vld [vmem:[%s452_s1 + $0x28] sm:$0xff] }
   0xe   :  { %140 = vmatpush.msra.mxu1 %v74_v24  ;;  %163 = vmatpush.msra.mxu2 %v90_v25  ;;  %v103_v38 = vld [vmem:[%s452_s1 + $0x1b8] sm:$0xff]  ;;  %v70_v40 = vld [vmem:[%s452_s1 + $0xb0] sm:$0xff]  ;;  %v69_v44 = vld [vmem:[%s452_s1 + $0xa8] sm:$0xff] }
   0xf   :  { %186 = vmatpush.msra.mxu3 %v106_v26  ;;  %118 = vmatpush.msra.mxu0 %v57_v27  ;;  %v86_v41 = vld [vmem:[%s452_s1 + $0x130] sm:$0xff]  ;;  %v85_v45 = vld [vmem:[%s452_s1 + $0x128] sm:$0xff]  ;;  %v52_v47 = vld [vmem:[%s452_s1 + $0x20] sm:$0xff] }
  0x10   :  { %141 = vmatpush.msra.mxu1 %v73_v28  ;;  %164 = vmatpush.msra.mxu2 %v89_v29  ;;  %v102_v42 = vld [vmem:[%s452_s1 + $0x1b0] sm:$0xff]  ;;  %v101_v46 = vld [vmem:[%s452_s1 + $0x1a8] sm:$0xff]  ;;  %v68_v48 = vld [vmem:[%s452_s1 + $0xa0] sm:$0xff] }
  0x11   :  { %187 = vmatpush.msra.mxu3 %v105_v30  ;;  %119 = vmatpush.msra.mxu0 %v56_v31  ;;  %v84_v49 = vld [vmem:[%s452_s1 + $0x120] sm:$0xff]  ;;  %v51_v51 = vld [vmem:[%s452_s1 + $0x18] sm:$0xff]  ;;  %v50_v55 = vld [vmem:[%s452_s1 + $0x10] sm:$0xff] }
  0x12   :  { %142 = vmatpush.msra.mxu1 %v72_v32  ;;  %165 = vmatpush.msra.mxu2 %v88_v33  ;;  %v100_v50 = vld [vmem:[%s452_s1 + $0x1a0] sm:$0xff]  ;;  %v67_v52 = vld [vmem:[%s452_s1 + $0x98] sm:$0xff]  ;;  %v66_v56 = vld [vmem:[%s452_s1 + $0x90] sm:$0xff] }
  0x13   :  { %188 = vmatpush.msra.mxu3 %v104_v34  ;;  %120 = vmatpush.msra.mxu0 %v55_v35  ;;  %v83_v53 = vld [vmem:[%s452_s1 + $0x118] sm:$0xff]  ;;  %v82_v57 = vld [vmem:[%s452_s1 + $0x110] sm:$0xff]  ;;  %v49_v59 = vld [vmem:[%s452_s1 + $0x8] sm:$0xff] }
  0x14   :  { %143 = vmatpush.msra.mxu1 %v71_v36  ;;  %166 = vmatpush.msra.mxu2 %v87_v37  ;;  %v99_v54 = vld [vmem:[%s452_s1 + $0x198] sm:$0xff]  ;;  %v98_v58 = vld [vmem:[%s452_s1 + $0x190] sm:$0xff]  ;;  %v65_v60 = vld [vmem:[%s452_s1 + $0x88] sm:$0xff] }
  0x15   :  { %189 = vmatpush.msra.mxu3 %v103_v38  ;;  %121 = vmatpush.msra.mxu0 %v54_v39  ;;  %v81_v61 = vld [vmem:[%s452_s1 + $0x108] sm:$0xff]  ;;  %v48_v63 = vld [vmem:[%s452_s1] sm:$0xff] }
  0x16   :  { %144 = vmatpush.msra.mxu1 %v70_v40  ;;  %167 = vmatpush.msra.mxu2 %v86_v41  ;;  %v97_v62 = vld [vmem:[%s452_s1 + $0x188] sm:$0xff]  ;;  %v64_v0 = vld [vmem:[%s452_s1 + $0x80] sm:$0xff] }
  0x17   :  { %190 = vmatpush.msra.mxu3 %v102_v42  ;;  %122 = vmatpush.msra.mxu0 %v53_v43  ;;  %v80_v1 = vld [vmem:[%s452_s1 + $0x100] sm:$0xff] }
  0x18   :  { %145 = vmatpush.msra.mxu1 %v69_v44  ;;  %168 = vmatpush.msra.mxu2 %v85_v45  ;;  %v96_v2 = vld [vmem:[%s452_s1 + $0x180] sm:$0xff] }
  0x19   :  { %191 = vmatpush.msra.mxu3 %v101_v46  ;;  %123 = vmatpush.msra.mxu0 %v52_v47 }
  0x1a   :  { %146 = vmatpush.msra.mxu1 %v68_v48  ;;  %169 = vmatpush.msra.mxu2 %v84_v49 }
  0x1b   :  { %192 = vmatpush.msra.mxu3 %v100_v50  ;;  %124 = vmatpush.msra.mxu0 %v51_v51 }
  0x1c   :  { %147 = vmatpush.msra.mxu1 %v67_v52  ;;  %170 = vmatpush.msra.mxu2 %v83_v53 }
  0x1d   :  { %193 = vmatpush.msra.mxu3 %v99_v54  ;;  %125 = vmatpush.msra.mxu0 %v50_v55 }
  0x1e   :  { %148 = vmatpush.msra.mxu1 %v66_v56  ;;  %171 = vmatpush.msra.mxu2 %v82_v57 }
  0x1f   :  { %194 = vmatpush.msra.mxu3 %v98_v58  ;;  %126 = vmatpush.msra.mxu0 %v49_v59 }
  0x20   :  { %149 = vmatpush.msra.mxu1 %v65_v60  ;;  %172 = vmatpush.msra.mxu2 %v81_v61 }
  0x21   :  { %195 = vmatpush.msra.mxu3 %v97_v62  ;;  %127 = vmatpush.msra.mxu0 %v48_v63 }
  0x22   :  { %150 = vmatpush.msra.mxu1 %v64_v0  ;;  %173 = vmatpush.msra.mxu2 %v80_v1 }
  0x23   :  { %196 = vmatpush.msra.mxu3 %v96_v2 }
  0x74   :  { %v20_v8 = vpop.permute.xlu0 %19 }
  0x75   :  { %vm24_vm0 = vcmp.eq.s32.totalorder %v14_v4, %v20_v8  ;;  %vm25_vm1 = vcmp.eq.s32.totalorder %v15_v5, %v20_v8  ;;  %vm26_vm2 = vcmp.eq.s32.totalorder %v16_v6, %v20_v8  ;;  %vm27_vm3 = vcmp.eq.s32.totalorder %v17_v7, %v20_v8 }
  0x76   :  { %219 = vmatmul.msk.f32.vlgmr.msra.gmra.mxu0 %vm24_vm0, %v231_v9  ;;  %221 = vmatmul.msk.f32.vlgmr.msra.gmra.mxu1 %vm25_vm1, %v231_v9 }
  0x77   :  { %223 = vmatmul.msk.f32.vlgmr.msra.gmra.mxu2 %vm26_vm2, %v231_v9  ;;  %225 = vmatmul.msk.f32.vlgmr.msra.gmra.mxu3 %vm27_vm3, %v231_v9 }
  0x7c   :  { %v23_v10 = vpop.permute.xlu0 %22 }
  0x7d   :  { %vm28_vm4 = vcmp.eq.s32.totalorder %v14_v4, %v23_v10  ;;  %vm29_vm5 = vcmp.eq.s32.totalorder %v15_v5, %v23_v10  ;;  %vm30_vm6 = vcmp.eq.s32.totalorder %v16_v6, %v23_v10  ;;  %vm31_vm7 = vcmp.eq.s32.totalorder %v17_v7, %v23_v10 }
  0x7e   :  { %220 = vmatmul.msk.f32.gmra.mxu0 %vm28_vm4, %v231_v9  ;;  %222 = vmatmul.msk.f32.gmra.mxu1 %vm29_vm5, %v231_v9 }
  0x7f   :  { %224 = vmatmul.msk.f32.gmra.mxu2 %vm30_vm6, %v231_v9  ;;  %226 = vmatmul.msk.f32.gmra.mxu3 %vm31_vm7, %v231_v9 }
  0xf3   :  { %v129_v11 = vpop.f32.mrf.mxu0  ;;  %v152_v12 = vpop.f32.mrf.mxu1 }
  0xf4   :  { %v153_v13 = vadd.f32 %v152_v12, %v129_v11 }
  0xfa   :  { %v175_v14 = vpop.f32.mrf.mxu2  ;;  %v198_v15 = vpop.f32.mrf.mxu3 }
  0xfb   :  { %v176_v16 = vadd.f32 %v175_v14, %v153_v13  ;;  %v132_v18 = vpop.f32.mrf.mxu0  ;;  %v155_v19 = vpop.f32.mrf.mxu1 }
  0xfc   :  { %v156_v20 = vadd.f32 %v155_v19, %v132_v18 }
  0xfd   :  { %v199_v17 = vadd.f32 %v198_v15, %v176_v16 }
  0xff   :  { %205 = vst.msk [vmem:[%s453_s2] sm:$0xff] %vm204_vm8, %v199_v17 }
 0x102   :  { %v178_v21 = vpop.f32.mrf.mxu2  ;;  %v201_v23 = vpop.f32.mrf.mxu3 }
 0x103   :  { %v179_v22 = vadd.f32 %v178_v21, %v156_v20 }
 0x105   :  { %v202_v24 = vadd.f32 %v201_v23, %v179_v22 }
 0x107   :  { %206 = vst.msk [vmem:[%s453_s2 + $0x8] sm:$0xff] %vm204_vm8, %v202_v24 }

// kernel: gpt2_forward_pallas.7
= control target key start
LH: loop header
LB: loop body
LE: loop exit
PB: predicated region body
PF: predicated region fallthrough
CT: control target
= control target key end

     0   :  { %vm43_vm0 = vcmask 261120   ;;  %s296_s0 = inlined_call_operand.vmem [shape: f32[16,32], index: 0, kind: input, shape index: {}]   ;;  %s297_s1 = inlined_call_operand.vmem [shape: f32[32,512], index: 1, kind: input, shape index: {}]   ;;  %s298_s2 = inlined_call_operand.vmem [shape: f32[1,512], index: 2, kind: input, shape index: {}]   ;;  %s299_s3 = inlined_call_operand.hbm [shape: f32[16,512], index: 3, kind: output, shape index: {}]  }
   0x1   :  { %v31_v0 = vld [vmem:[%s297_s1 + $0x70] sm:$0xff]  ;;  %v32_v1 = vld [vmem:[%s297_s1 + $0x78] sm:$0xff]  ;;  %v29_v6 = vld [vmem:[%s297_s1 + $0x60] sm:$0xff] }
   0x2   :  { %v27_v2 = vld [vmem:[%s297_s1 + $0x50] sm:$0xff]  ;;  %108 = vmatpush.msra.mxu2 %v31_v0  ;;  %131 = vmatpush.msra.mxu3 %v32_v1  ;;  %v28_v3 = vld [vmem:[%s297_s1 + $0x58] sm:$0xff]  ;;  %v30_v7 = vld [vmem:[%s297_s1 + $0x68] sm:$0xff] }
   0x3   :  { %v23_v4 = vld [vmem:[%s297_s1 + $0x30] sm:$0xff]  ;;  %v24_v5 = vld [vmem:[%s297_s1 + $0x38] sm:$0xff]  ;;  %v25_v8 = vld [vmem:[%s297_s1 + $0x40] sm:$0xff]  ;;  %62 = vmatpush.msra.mxu0 %v29_v6  ;;  %85 = vmatpush.msra.mxu1 %v30_v7 }
   0x4   :  { %109 = vmatpush.msra.mxu2 %v27_v2  ;;  %132 = vmatpush.msra.mxu3 %v28_v3  ;;  %v19_v9 = vld [vmem:[%s297_s1 + $0x10] sm:$0xff]  ;;  %v20_v10 = vld [vmem:[%s297_s1 + $0x18] sm:$0xff]  ;;  %v26_v11 = vld [vmem:[%s297_s1 + $0x48] sm:$0xff] }
   0x5   :  { %v15_v12 = vld [vmem:[%s296_s0] sm:$0xff]  ;;  %63 = vmatpush.msra.mxu0 %v25_v8  ;;  %86 = vmatpush.msra.mxu1 %v26_v11  ;;  %v22_v14 = vld [vmem:[%s297_s1 + $0x28] sm:$0xff] }
   0x6   :  { %110 = vmatpush.msra.mxu2 %v23_v4  ;;  %133 = vmatpush.msra.mxu3 %v24_v5  ;;  %v21_v13 = vld [vmem:[%s297_s1 + $0x20] sm:$0xff] }
   0x7   :  { %8 = vsyncpa [#allocation3], 0  ;;  %v17_v15 = vld [vmem:[%s297_s1] sm:$0xff]  ;;  %v18_v16 = vld [vmem:[%s297_s1 + $0x8] sm:$0xff]  ;;  %64 = vmatpush.msra.mxu0 %v21_v13  ;;  %87 = vmatpush.msra.mxu1 %v22_v14  ;;  %s156_s24 = sshll.u32 %s299_s3, 4  ;;  %s206_s25 = smov 512   ;;  %s157_s24 = int_to_ptr.hbm [resolvable:$true] %s156_s24 }
   0x8   :  { %111 = vmatpush.msra.mxu2 %v19_v9  ;;  %134 = vmatpush.msra.mxu3 %v20_v10  ;;  %v16_v17 = vld [vmem:[%s296_s0 + $0x8] sm:$0xff]  ;;  %v33_v18 = vld [vmem:[%s298_s2] sm:$0xf]  ;;  %s205_s0 = smov [#allocation2]   ;;  %s207_s26 = smov 32  }
   0x9   :  { %172 = vmatmul.msk.f32.vlgmr.msra.gmra.mxu2 %vm43_vm0, %v15_v12  ;;  %174 = vmatmul.msk.f32.vlgmr.msra.gmra.mxu3 %vm43_vm0, %v15_v12  ;;  %v35_v19 = vperm.slane %v33_v18, 0  ;;  %v36_v20 = vperm.slane %v33_v18, 1  ;;  %v37_v21 = vperm.slane %v33_v18, 2  ;;  %v38_v22 = vperm.slane %v33_v18, 3  ;;  %s154_s2 = sshll.u32 %s205_s0, 4  ;;  %s155_s2 = int_to_ptr.vmem [resolvable:$true] %s154_s2 }
   0xa   :  { %65 = vmatpush.msra.mxu0 %v17_v15  ;;  %88 = vmatpush.msra.mxu1 %v18_v16 }
   0xb   :  { %168 = vmatmul.msk.f32.vlgmr.msra.gmra.mxu0 %vm43_vm0, %v15_v12  ;;  %170 = vmatmul.msk.f32.vlgmr.msra.gmra.mxu1 %vm43_vm0, %v15_v12 }
  0x11   :  { %173 = vmatmul.msk.f32.gmra.mxu2 %vm43_vm0, %v16_v17  ;;  %175 = vmatmul.msk.f32.gmra.mxu3 %vm43_vm0, %v16_v17 }
  0x13   :  { %169 = vmatmul.msk.f32.gmra.mxu0 %vm43_vm0, %v16_v17  ;;  %171 = vmatmul.msk.f32.gmra.mxu1 %vm43_vm0, %v16_v17 }
  0x88   :  { %v67_v23 = vpop.f32.mrf.mxu0  ;;  %v90_v24 = vpop.f32.mrf.mxu1 }
  0x89   :  { %v68_v25 = vadd.f32 %v67_v23, %v35_v19  ;;  %v91_v26 = vadd.f32 %v90_v24, %v36_v20 }
  0x8b   :  { %142 = vst [vmem:[#allocation2] sm:$0xff] %v68_v25 }
  0x8c   :  { %v113_v27 = vpop.f32.mrf.mxu2  ;;  %v136_v28 = vpop.f32.mrf.mxu3  ;;  %143 = vst [vmem:[#allocation2 + $0x8] sm:$0xff] %v91_v26 }
  0x8d   :  { %v114_v29 = vadd.f32 %v113_v27, %v37_v21  ;;  %v137_v30 = vadd.f32 %v136_v28, %v38_v22 }
  0x8f   :  { %144 = vst [vmem:[#allocation2 + $0x10] sm:$0xff] %v114_v29 }
  0x90   :  { %145 = vst [vmem:[#allocation2 + $0x18] sm:$0xff] %v137_v30  ;;  %v70_v31 = vpop.f32.mrf.mxu0  ;;  %v93_v32 = vpop.f32.mrf.mxu1 }
  0x91   :  { %v71_v33 = vadd.f32 %v70_v31, %v35_v19  ;;  %v94_v34 = vadd.f32 %v93_v32, %v36_v20 }
  0x93   :  { %146 = vst [vmem:[#allocation2 + $0x20] sm:$0xff] %v71_v33 }
  0x94   :  { %v116_v35 = vpop.f32.mrf.mxu2  ;;  %v139_v36 = vpop.f32.mrf.mxu3  ;;  %147 = vst [vmem:[#allocation2 + $0x28] sm:$0xff] %v94_v34 }
  0x95   :  { %v117_v37 = vadd.f32 %v116_v35, %v37_v21  ;;  %v140_v38 = vadd.f32 %v139_v36, %v38_v22 }
  0x97   :  { %148 = vst [vmem:[#allocation2 + $0x30] sm:$0xff] %v117_v37 }
  0x98   :  { %149 = vst [vmem:[#allocation2 + $0x38] sm:$0xff] %v140_v38 }
  0x99   :  { %162 = dma.vmem_to_hbm [thread:$0]  %s155_s2, 1024, %s157_s24, [#allocation3], %s206_s25, %s206_s25, %s207_s26  }
  0x9a   :  { %203 = dma.done.wait [#allocation3], 1024  }
  0x9b   :  { %204 = vsyncadd [#allocation3], 4294966272 }
  0x9c   :  { %167 = vsyncpa [#allocation3], 1 }

// kernel: gpt2_forward_pallas.5
= control target key start
LH: loop header
LB: loop body
LE: loop exit
PB: predicated region body
PF: predicated region fallthrough
CT: control target
= control target key end

     0   :  { %vm56_vm0 = vcmask 261120   ;;  %s826_s22 = smov 112   ;;  %s827_s23 = smov 104   ;;  %vm196_vm1 = vcmask 64512   ;;  %vm270_vm2 = vcmask 523264   ;;  %vm450_vm3 = vcmask 130048   ;;  %s1231_s3 = inlined_call_operand.vmem [shape: f32[32,32], index: 3, kind: input, shape index: {}]   ;;  %s1232_s2 = inlined_call_operand.vmem [shape: f32[32,32], index: 2, kind: input, shape index: {}]   ;;  %s1233_s0 = inlined_call_operand.vmem [shape: f32[16,32], index: 0, kind: input, shape index: {}]   ;;  %s1234_s4 = inlined_call_operand.vmem [shape: f32[32,32], index: 4, kind: input, shape index: {}]   ;;  %s1235_s1 = inlined_call_operand.vmem [shape: f32[64,64], index: 1, kind: input, shape index: {}]   ;;  %s1236_s6 = inlined_call_operand.vmem [shape: f32[1,32], index: 6, kind: input, shape index: {}]   ;;  %s1237_s5 = inlined_call_operand.vmem [shape: f32[32,32], index: 5, kind: input, shape index: {}]   ;;  %s1238_s7 = inlined_call_operand.vmem [shape: f32[1,32], index: 7, kind: input, shape index: {}]   ;;  %s1239_s8 = inlined_call_operand.vmem [shape: f32[1,32], index: 8, kind: input, shape index: {}]   ;;  %s1240_s10 = inlined_call_operand.vmem [shape: f32[1,128], index: 10, kind: input, shape index: {}]   ;;  %s1241_s9 = inlined_call_operand.vmem [shape: f32[32,128], index: 9, kind: input, shape index: {}]   ;;  %s1242_s11 = inlined_call_operand.vmem [shape: f32[128,32], index: 11, kind: input, shape index: {}]   ;;  %s1243_s12 = inlined_call_operand.vmem [shape: f32[1,32], index: 12, kind: input, shape index: {}]   ;;  %s1244_s13 = inlined_call_operand.vmem [shape: f32[1,32], index: 13, kind: input, shape index: {}]   ;;  %s1245_s14 = inlined_call_operand.vmem [shape: f32[1,32], index: 14, kind: input, shape index: {}]   ;;  %s1246_s15 = inlined_call_operand.vmem [shape: f32[16,32], index: 15, kind: output, shape index: {}]  }
   0x1   :  { %v89_v0 = vld [vmem:[%s1231_s3 + $0x18] sm:$0xff]  ;;  %v88_v1 = vld [vmem:[%s1231_s3 + $0x10] sm:$0xff]  ;;  %v87_v2 = vld [vmem:[%s1231_s3 + $0x8] sm:$0xff]  ;;  %vm453_vm4 = vcmask 195584  }
   0x2   :  { %102 = vmatpush.msra.mxu1 %v89_v0  ;;  %v55_v3 = vld [vmem:[%s1232_s2 + $0x18] sm:$0xff]  ;;  %v54_v4 = vld [vmem:[%s1232_s2 + $0x10] sm:$0xff]  ;;  %v86_v5 = vld [vmem:[%s1231_s3] sm:$0xff] }
   0x3   :  { %75 = vmatpush.msra.mxu0 %v55_v3  ;;  %v53_v6 = vld [vmem:[%s1232_s2 + $0x8] sm:$0xff]  ;;  %v936_v7 = vld [vmem:[%s1233_s0] sm:$0xff]  ;;  %v116_v14 = vld [vmem:[%s1234_s4 + $0x18] sm:$0xff] }
   0x4   :  { %103 = vmatpush.msra.mxu1 %v88_v1  ;;  %v52_v8 = vld [vmem:[%s1232_s2] sm:$0xff]  ;;  %v948_v9 = vld [vmem:[%s1233_s0 + $0x8] sm:$0xff]  ;;  %s825_s2 = smov 120   ;;  %v115_v15 = vld [vmem:[%s1234_s4 + $0x10] sm:$0xff]  ;;  %129 = vmatpush.msra.mxu2 %v116_v14 }
   0x5   :  { %76 = vmatpush.msra.mxu0 %v54_v4  ;;  %v114_v16 = vld [vmem:[%s1234_s4 + $0x8] sm:$0xff]  ;;  %v113_v17 = vld [vmem:[%s1234_s4] sm:$0xff]  ;;  %v190_v33 = vld [vmem:[%s1235_s1 + $0x10] sm:$0xff] }
   0x6   :  { %104 = vmatpush.msra.mxu1 %v87_v2  ;;  %130 = vmatpush.msra.mxu2 %v115_v15  ;;  %v188_v32 = vld [vmem:[%s1235_s1] sm:$0xff]  ;;  %v189_v40 = vld [vmem:[%s1235_s1 + $0x8] sm:$0xff]  ;;  %v191_v41 = vld [vmem:[%s1235_s1 + $0x18] sm:$0xff] }
   0x7   :  { %77 = vmatpush.msra.mxu0 %v53_v6  ;;  %v192_v48 = vld [vmem:[%s1235_s1 + $0x20] sm:$0xff]  ;;  %v193_v52 = vld [vmem:[%s1235_s1 + $0x28] sm:$0xff]  ;;  %v194_v56 = vld [vmem:[%s1235_s1 + $0x30] sm:$0xff] }
   0x8   :  { %105 = vmatpush.msra.mxu1 %v86_v5  ;;  %131 = vmatpush.msra.mxu2 %v114_v16  ;;  %v195_v61 = vld [vmem:[%s1235_s1 + $0x38] sm:$0xff]  ;;  %s828_s1 = smov 8  }
   0x9   :  { %706 = vmatmul.msk.f32.vlgmr.msra.gmra.mxu1 %vm56_vm0, %v936_v7  ;;  %78 = vmatpush.msra.mxu0 %v52_v8 }
   0xa   :  { %704 = vmatmul.msk.f32.vlgmr.msra.gmra.mxu0 %vm56_vm0, %v936_v7  ;;  %132 = vmatpush.msra.mxu2 %v113_v17 }
   0xb   :  { %708 = vmatmul.msk.f32.vlgmr.msra.gmra.mxu2 %vm56_vm0, %v936_v7 }
  0x11   :  { %707 = vmatmul.msk.f32.gmra.mxu1 %vm56_vm0, %v948_v9 }
  0x12   :  { %705 = vmatmul.msk.f32.gmra.mxu0 %vm56_vm0, %v948_v9 }
  0x13   :  { %709 = vmatmul.msk.f32.gmra.mxu2 %vm56_vm0, %v948_v9 }
  0x86   :  { %v107_v10 = vpop.f32.mrf.mxu1 }
  0x87   :  { %v80_v12 = vpop.f32.mrf.mxu0 }
  0x8e   :  { %v110_v11 = vpop.f32.mrf.mxu1  ;;  %v1006_v30 = vpop.f32.mrf.mxu2 }
  0x8f   :  { %158 = vrot.lane.b32.xlu2 %v110_v11, %s825_s2  ;;  %162 = vrot.lane.b32.xlu1 %v110_v11, %s826_s22  ;;  %v83_v13 = vpop.f32.mrf.mxu0 }
  0x90   :  { %166 = vrot.lane.b32.xlu0 %v110_v11, %s827_s23 }
  0x96   :  { %v1008_v31 = vpop.f32.mrf.mxu2 }
  0x97   :  { %156 = vrot.lane.b32.xlu2 %v107_v10, %s825_s2  ;;  %160 = vrot.lane.b32.xlu1 %v107_v10, %s826_s22  ;;  %v761_v59 = vpack.i.bf16 %v1006_v30, %v1008_v31 }
  0x98   :  { %164 = vrot.lane.b32.xlu0 %v107_v10, %s827_s23 }
  0x9f   :  { %144 = vrot.lane.b32.xlu1 %v83_v13, %s825_s2  ;;  %146 = vrot.lane.b32.xlu2 %v80_v12, %s826_s22 }
  0xa0   :  { %142 = vrot.lane.b32.xlu0 %v80_v12, %s825_s2 }
  0xa7   :  { %150 = vrot.lane.b32.xlu1 %v80_v12, %s827_s23  ;;  %152 = vrot.lane.b32.xlu2 %v83_v13, %s827_s23 }
  0xa8   :  { %148 = vrot.lane.b32.xlu0 %v83_v13, %s826_s22 }
  0xe9   :  { %v159_v21 = vpop.permute.xlu2 %158 }
  0xf1   :  { %v157_v23 = vpop.permute.xlu2 %156 }
  0xf9   :  { %v147_v26 = vpop.permute.xlu2 %146 }
 0x101   :  { %v163_v19 = vpop.permute.xlu1 %162  ;;  %v153_v29 = vpop.permute.xlu2 %152 }
 0x102   :  { %v167_v18 = vpop.permute.xlu0 %166 }
 0x103   :  { %710 = vmatpush.xpose.msk.msrb.mxu2 %vm196_vm1, %v167_v18  ;;  %738 = vmatpush.xpose.msk.msra.mxu3 %vm196_vm1, %v167_v18 }
 0x109   :  { %v161_v22 = vpop.permute.xlu1 %160 }
 0x10a   :  { %v165_v20 = vpop.permute.xlu0 %164 }
 0x10b   :  { %711 = vmatpush.xpose.msk.msrb.mxu2 %vm196_vm1, %v165_v20  ;;  %739 = vmatpush.xpose.msk.msra.mxu3 %vm196_vm1, %v165_v20 }
 0x10f   :  { %712 = vmatpush.xpose.msk.msrb.mxu2 %vm196_vm1, %v163_v19  ;;  %740 = vmatpush.xpose.msk.msra.mxu3 %vm196_vm1, %v163_v19 }
 0x111   :  { %v145_v25 = vpop.permute.xlu1 %144 }
 0x112   :  { %v143_v24 = vpop.permute.xlu0 %142 }
 0x113   :  { %713 = vmatpush.xpose.msk.msrb.mxu2 %vm196_vm1, %v161_v22  ;;  %741 = vmatpush.xpose.msk.msra.mxu3 %vm196_vm1, %v161_v22 }
 0x117   :  { %714 = vmatpush.xpose.msk.msrb.mxu2 %vm196_vm1, %v159_v21  ;;  %742 = vmatpush.xpose.msk.msra.mxu3 %vm196_vm1, %v159_v21 }
 0x119   :  { %v151_v28 = vpop.permute.xlu1 %150 }
 0x11a   :  { %v149_v27 = vpop.permute.xlu0 %148 }
 0x11b   :  { %715 = vmatpush.xpose.msk.msrb.mxu2 %vm196_vm1, %v157_v23  ;;  %743 = vmatpush.xpose.msk.msra.mxu3 %vm196_vm1, %v157_v23 }
 0x11f   :  { %716 = vmatpush.xpose.msk.msrb.mxu2 %vm196_vm1, %v110_v11  ;;  %744 = vmatpush.xpose.msk.msra.mxu3 %vm196_vm1, %v110_v11 }
 0x123   :  { %717 = vmatpush.xpose.msk.msrb.mxu2 %vm196_vm1, %v107_v10  ;;  %745 = vmatpush.xpose.msk.msra.mxu3 %vm196_vm1, %v107_v10 }
 0x126   :  { %718 = vmatmul.msk.f32.vlgmr.msrb.gmra.mxu2 %vm196_vm1, %v80_v12  ;;  %720 = vmatmul.msk.f32.vlgmr.msra.gmra.mxu3 %vm196_vm1, %v143_v24 }
 0x12e   :  { %719 = vmatmul.msk.f32.gmra.mxu2 %vm196_vm1, %v83_v13  ;;  %721 = vmatmul.msk.f32.gmra.mxu3 %vm196_vm1, %v145_v25 }
 0x136   :  { %722 = vmatmul.msk.f32.gmra.mxu3 %vm196_vm1, %v147_v26 }
 0x13e   :  { %723 = vmatmul.msk.f32.gmra.mxu3 %vm196_vm1, %v149_v27 }
 0x146   :  { %724 = vmatmul.msk.f32.gmra.mxu3 %vm196_vm1, %v151_v28 }
 0x14e   :  { %725 = vmatmul.msk.f32.gmra.mxu3 %vm196_vm1, %v153_v29 }
 0x1a9   :  { %v246_v34 = vpop.f32.mrf.mxu2  ;;  %v252_v35 = vpop.f32.mrf.mxu3 }
 0x1aa   :  { %v247_v36 = vadd.f32 %v246_v34, %v188_v32  ;;  %v1016_v37 = vadd.f32 %v252_v35, %v190_v33 }
 0x1ac   :  { %v277_v38 = vsel %vm270_vm2, %v1016_v37, -inf  ;;  %v271_v39 = vsel %vm270_vm2, %v247_v36, -inf }
 0x1ad   :  { %278 = vmax.xlane.f32.xlu2 %v277_v38  ;;  %272 = vmax.xlane.f32.xlu0 %v271_v39 }
 0x1b1   :  { %v249_v42 = vpop.f32.mrf.mxu2  ;;  %v255_v43 = vpop.f32.mrf.mxu3 }
 0x1b2   :  { %v250_v44 = vadd.f32 %v249_v42, %v189_v40  ;;  %v256_v45 = vadd.f32 %v255_v43, %v191_v41 }
 0x1b4   :  { %v280_v46 = vsel %vm270_vm2, %v256_v45, -inf  ;;  %v274_v47 = vsel %vm270_vm2, %v250_v44, -inf }
 0x1b5   :  { %281 = vmax.xlane.f32.xlu2 %v280_v46  ;;  %275 = vmax.xlane.f32.xlu1 %v274_v47 }
 0x1b9   :  { %v258_v49 = vpop.f32.mrf.mxu3 }
 0x1ba   :  { %v259_v50 = vadd.f32 %v258_v49, %v192_v48 }
 0x1bc   :  { %v283_v51 = vsel %vm270_vm2, %v259_v50, -inf }
 0x1bd   :  { %284 = vmax.xlane.f32.xlu0 %v283_v51 }
 0x1c1   :  { %v261_v53 = vpop.f32.mrf.mxu3 }
 0x1c2   :  { %v262_v54 = vadd.f32 %v261_v53, %v193_v52 }
 0x1c4   :  { %v286_v55 = vsel %vm270_vm2, %v262_v54, -inf }
 0x1c5   :  { %287 = vmax.xlane.f32.xlu1 %v286_v55 }
 0x1c9   :  { %v264_v57 = vpop.f32.mrf.mxu3 }
 0x1ca   :  { %v265_v58 = vadd.f32 %v264_v57, %v194_v56 }
 0x1cc   :  { %v289_v60 = vsel %vm270_vm2, %v265_v58, -inf }
 0x1cd   :  { %762 = vrot.lane.b32.xlu2 %v761_v59, %s827_s23  ;;  %290 = vmax.xlane.f32.xlu0 %v289_v60 }
 0x1d1   :  { %v267_v62 = vpop.f32.mrf.mxu3 }
 0x1d2   :  { %v1048_v63 = vadd.f32 %v267_v62, %v195_v61 }
 0x1d4   :  { %v292_v0 = vsel %vm270_vm2, %v1048_v63, -inf }
 0x1de   :  { %767 = vrot.lane.b32.xlu1 %v761_v59, %s826_s22  ;;  %s830_s22 = smov 24  }
 0x1f6   :  { %293 = vmax.xlane.f32.xlu2 %v292_v0 }
 0x220   :  { %v279_v1 = vpop.xlane.xlu2 %278  ;;  %v273_v2 = vpop.xlane.xlu0 %272 }
 0x221   :  { %v295_v3 = vsub.f32 %v247_v36, %v273_v2  ;;  %v297_v43 = vsub.f32 %v1016_v37, %v279_v1 }
 0x223   :  { %v303_v4 = vmul.f32 1.442695, %v295_v3 }
 0x225   :  { %783 = vpow2.f32 %v303_v4 }
 0x228   :  { %v282_v5 = vpop.xlane.xlu2 %281  ;;  %v276_v6 = vpop.xlane.xlu1 %275 }
 0x229   :  { %v298_v8 = vsub.f32 %v256_v45, %v282_v5  ;;  %v296_v10 = vsub.f32 %v250_v44, %v276_v6  ;;  %v307_v44 = vmul.f32 1.442695, %v297_v43 }
 0x22b   :  { %v309_v11 = vmul.f32 1.442695, %v298_v8  ;;  %v305_v12 = vmul.f32 1.442695, %v296_v10  ;;  %v1052_v13 = vpop.eup %783 }
 0x22c   :  { %v319_v14 = vsel %vm270_vm2, %v1052_v13, 0.0 }
 0x22d   :  { %785 = vpow2.f32 %v309_v11  ;;  %320 = vadd.xlane.f32.xlu0 %v319_v14 }
 0x22e   :  { %787 = vpow2.f32 %v305_v12 }
 0x230   :  { %v285_v15 = vpop.xlane.xlu0 %284  ;;  %v763_v16 = vpop.permute.xlu2 %762 }
 0x231   :  { %v299_v17 = vsub.f32 %v259_v50, %v285_v15  ;;  %v764_v18 = vunpack.i.l.bf16 %v763_v16  ;;  %v765_v21 = vunpack.i.h.bf16 %v763_v16 }
 0x233   :  { %v1056_v19 = vpop.eup %785  ;;  %v311_v20 = vmul.f32 1.442695, %v299_v17  ;;  %391 = vmatpush.msrb.mxu0 %v764_v18  ;;  %746 = vmatpush.msrb.mxu1 %v764_v18 }
 0x234   :  { %v1058_v22 = vpop.eup %787  ;;  %v328_v23 = vsel %vm270_vm2, %v1056_v19, 0.0 }
 0x235   :  { %789 = vpow2.f32 %v311_v20  ;;  %392 = vmatpush.msrb.mxu0 %v765_v21  ;;  %747 = vmatpush.msrb.mxu1 %v765_v21  ;;  %v322_v24 = vsel %vm270_vm2, %v1058_v22, 0.0 }
 0x236   :  { %329 = vadd.xlane.f32.xlu2 %v328_v23  ;;  %323 = vadd.xlane.f32.xlu1 %v322_v24  ;;  %v458_v23 = vld [vmem:[%s1237_s5 + $0x10] sm:$0xff]  ;;  %v457_v24 = vld [vmem:[%s1237_s5 + $0x8] sm:$0xff] }
 0x238   :  { %v288_v25 = vpop.xlane.xlu1 %287 }
 0x239   :  { %v300_v26 = vsub.f32 %v262_v54, %v288_v25  ;;  %v456_v25 = vld [vmem:[%s1237_s5] sm:$0xff] }
 0x23b   :  { %v1064_v27 = vpop.eup %789  ;;  %v313_v28 = vmul.f32 1.442695, %v300_v26 }
 0x23c   :  { %v331_v29 = vsel %vm270_vm2, %v1064_v27, 0.0 }
 0x23d   :  { %791 = vpow2.f32 %v313_v28 }
 0x23e   :  { %332 = vadd.xlane.f32.xlu1 %v331_v29 }
 0x240   :  { %v291_v32 = vpop.xlane.xlu0 %290 }
 0x241   :  { %v301_v33 = vsub.f32 %v265_v58, %v291_v32  ;;  %772 = vrot.lane.b32.xlu0 %v761_v59, %s825_s2  ;;  %s829_s2 = smov 16  }
 0x243   :  { %v1069_v34 = vpop.eup %791  ;;  %v315_v35 = vmul.f32 1.442695, %v301_v33 }
 0x244   :  { %v334_v36 = vsel %vm270_vm2, %v1069_v34, 0.0 }
 0x245   :  { %793 = vpow2.f32 %v315_v35  ;;  %335 = vadd.xlane.f32.xlu2 %v334_v36 }
 0x246   :  { %795 = vpow2.f32 %v307_v44 }
 0x24b   :  { %v1073_v38 = vpop.eup %793 }
 0x24c   :  { %v337_v39 = vsel %vm270_vm2, %v1073_v38, 0.0  ;;  %v796_v45 = vpop.eup %795 }
 0x24d   :  { %338 = vadd.xlane.f32.xlu1 %v337_v39  ;;  %v325_v48 = vsel %vm270_vm2, %v796_v45, 0.0 }
 0x250   :  { %v768_v40 = vpop.permute.xlu1 %767 }
 0x251   :  { %v769_v41 = vunpack.i.l.bf16 %v768_v40  ;;  %v770_v42 = vunpack.i.h.bf16 %v768_v40 }
 0x253   :  { %393 = vmatpush.msrb.mxu0 %v769_v41  ;;  %748 = vmatpush.msrb.mxu1 %v769_v41  ;;  %v776_v41 = vld [vmem:[%s1236_s6] ss:$0 sm:$0xff] }
 0x255   :  { %394 = vmatpush.msrb.mxu0 %v770_v42  ;;  %749 = vmatpush.msrb.mxu1 %v770_v42 }
 0x269   :  { %v294_v46 = vpop.xlane.xlu2 %293 }
 0x26a   :  { %v302_v47 = vsub.f32 %v1048_v63, %v294_v46 }
 0x26b   :  { %326 = vadd.xlane.f32.xlu0 %v325_v48 }
 0x26c   :  { %v317_v49 = vmul.f32 1.442695, %v302_v47 }
 0x26e   :  { %797 = vpow2.f32 %v317_v49 }
 0x274   :  { %v798_v50 = vpop.eup %797 }
 0x275   :  { %v340_v51 = vsel %vm270_vm2, %v798_v50, 0.0 }
 0x276   :  { %341 = vadd.xlane.f32.xlu0 %v340_v51 }
 0x2a0   :  { %v321_v52 = vpop.xlane.xlu0 %320 }
 0x2a1   :  { %799 = vrcp.f32 %v321_v52 }
 0x2a7   :  { %v800_v56 = vpop.eup %799 }
 0x2a8   :  { %v351_v57 = vmul.f32 %v800_v56, %v1052_v13 }
 0x2a9   :  { %v324_v55 = vpop.xlane.xlu1 %323  ;;  %v330_v61 = vpop.xlane.xlu2 %329 }
 0x2aa   :  { %801 = vrcp.f32 %v324_v55 }
 0x2b0   :  { %v802_v58 = vpop.eup %801 }
 0x2b1   :  { %v352_v59 = vmul.f32 %v802_v58, %v1058_v22  ;;  %v333_v0 = vpop.xlane.xlu1 %332  ;;  %v459_v22 = vld [vmem:[%s1237_s5 + $0x18] sm:$0xff] }
 0x2b3   :  { %v773_v53 = vpop.permute.xlu0 %772 }
 0x2b4   :  { %v774_v54 = vunpack.i.l.bf16 %v773_v53  ;;  %v775_v37 = vunpack.i.h.bf16 %v773_v53 }
 0x2b6   :  { %395 = vmatpush.msrb.mxu0 %v774_v54  ;;  %750 = vmatpush.msrb.mxu1 %v774_v54 }
 0x2b8   :  { %396 = vmatpush.msrb.mxu0 %v775_v37  ;;  %751 = vmatpush.msrb.mxu1 %v775_v37  ;;  %v336_v4 = vpop.xlane.xlu2 %335 }
 0x2ba   :  { %397 = vmatpush.msrb.mxu0 %v1008_v31  ;;  %752 = vmatpush.msrb.mxu1 %v1008_v31 }
 0x2bc   :  { %398 = vmatpush.msrb.mxu0 %v1006_v30  ;;  %753 = vmatpush.msrb.mxu1 %v1006_v30 }
 0x2bd   :  { %726 = vmatmul.msk.f32.vlgmr.msrb.gmra.mxu0 %vm270_vm2, %v351_v57 }
 0x2be   :  { %482 = vmatpush.msra.mxu1 %v459_v22  ;;  %v605_v22 = vld [vmem:[%s1242_s11 + $0x40] sm:$0xff] }
 0x2c0   :  { %v339_v8 = vpop.xlane.xlu1 %338  ;;  %483 = vmatpush.msra.mxu1 %v458_v23 }
 0x2c2   :  { %484 = vmatpush.msra.mxu1 %v457_v24 }
 0x2c4   :  { %485 = vmatpush.msra.mxu1 %v456_v25  ;;  %v604_v25 = vld [vmem:[%s1242_s11 + $0x38] sm:$0xff] }
 0x2c5   :  { %727 = vmatmul.msk.f32.gmra.mxu0 %vm270_vm2, %v352_v59 }
 0x2de   :  { %v327_v60 = vpop.xlane.xlu0 %326 }
 0x2df   :  { %803 = vrcp.f32 %v327_v60 }
 0x2e0   :  { %805 = vrcp.f32 %v330_v61 }
 0x2e5   :  { %v804_v62 = vpop.eup %803 }
 0x2e6   :  { %v353_v63 = vmul.f32 %v804_v62, %v796_v45  ;;  %v806_v1 = vpop.eup %805 }
 0x2e7   :  { %v354_v30 = vmul.f32 %v806_v1, %v1056_v19  ;;  %v559_v1 = vld [vmem:[%s1241_s9 + $0x8] sm:$0xff] }
 0x2e8   :  { %728 = vmatmul.msk.f32.gmra.mxu0 %vm270_vm2, %v353_v63 }
 0x2e9   :  { %v342_v31 = vpop.xlane.xlu0 %341 }
 0x2ea   :  { %807 = vrcp.f32 %v342_v31  ;;  %v561_v31 = vld [vmem:[%s1241_s9 + $0x18] sm:$0xff] }
 0x2eb   :  { %809 = vrcp.f32 %v333_v0  ;;  %584 = vmatpush.msra.mxu2 %v561_v31  ;;  %v560_v0 = vld [vmem:[%s1241_s9 + $0x10] sm:$0xff] }
 0x2ec   :  { %811 = vrcp.f32 %v336_v4 }
 0x2ed   :  { %813 = vrcp.f32 %v339_v8  ;;  %585 = vmatpush.msra.mxu2 %v560_v0  ;;  %v610_v8 = vld [vmem:[%s1242_s11 + $0x68] sm:$0xff] }
 0x2ef   :  { %586 = vmatpush.msra.mxu2 %v559_v1 }
 0x2f0   :  { %v808_v2 = vpop.eup %807  ;;  %729 = vmatmul.msk.f32.gmra.mxu0 %vm270_vm2, %v354_v30  ;;  %v558_v30 = vld [vmem:[%s1241_s9] sm:$0xff] }
 0x2f1   :  { %v358_v3 = vmul.f32 %v808_v2, %v798_v50  ;;  %v810_v5 = vpop.eup %809  ;;  %v831_v50 = vmov 32.0   ;;  %587 = vmatpush.msra.mxu2 %v558_v30 }
 0x2f2   :  { %v355_v6 = vmul.f32 %v810_v5, %v1064_v27  ;;  %v812_v10 = vpop.eup %811  ;;  %815 = vrcp.f32 %v831_v50  ;;  %v612_v5 = vld [vmem:[%s1242_s11 + $0x78] sm:$0xff]  ;;  %v597_v50 = vld [vmem:[%s1242_s11] sm:$0xff] }
 0x2f3   :  { %733 = vmatmul.msk.f32.vlgmr.msrb.gmra.mxu1 %vm270_vm2, %v358_v3  ;;  %v356_v11 = vmul.f32 %v812_v10, %v1069_v34  ;;  %v814_v12 = vpop.eup %813 }
 0x2f4   :  { %v357_v13 = vmul.f32 %v814_v12, %v1073_v38  ;;  %617 = vmatpush.msrb.mxu1 %v612_v5  ;;  %v609_v12 = vld [vmem:[%s1242_s11 + $0x60] sm:$0xff] }
 0x2f8   :  { %730 = vmatmul.msk.f32.gmra.mxu0 %vm270_vm2, %v355_v6  ;;  %v816_v51 = vpop.eup %815  ;;  %v611_v6 = vld [vmem:[%s1242_s11 + $0x70] sm:$0xff] }
 0x2f9   :  { %v504_v52 = vmul.f32 32.0, %v816_v51  ;;  %vm508_vm5 = vweird.f32 %v816_v51  ;;  %618 = vmatpush.msrb.mxu1 %v611_v6 }
 0x2fb   :  { %v505_v53 = vsub.f32 1.0, %v504_v52  ;;  %619 = vmatpush.msrb.mxu1 %v610_v8 }
 0x2fd   :  { %v506_v54 = vmul.f32 %v816_v51, %v505_v53  ;;  %620 = vmatpush.msrb.mxu1 %v609_v12 }
 0x2ff   :  { %v507_v37 = vadd.f32 %v816_v51, %v506_v54 }
 0x300   :  { %731 = vmatmul.msk.f32.gmra.mxu0 %vm270_vm2, %v356_v11 }
 0x301   :  { %v1122_v55 = vsel %vm508_vm5, %v816_v51, %v507_v37  ;;  %v779_v51 = vld [vmem:[%s1240_s10] ss:$0 sm:$0xff] }
 0x308   :  { %732 = vmatmul.msk.f32.gmra.mxu0 %vm270_vm2, %v357_v13 }
 0x33a   :  { %v400_v14 = vpop.f32.mrf.mxu0 }
 0x342   :  { %v403_v15 = vpop.f32.mrf.mxu0 }
 0x365   :  { %v406_v16 = vpop.f32.mrf.mxu0 }
 0x366   :  { %426 = vrot.lane.b32.xlu2 %v406_v16, %s828_s1  ;;  %v608_v16 = vld [vmem:[%s1242_s11 + $0x58] sm:$0xff] }
 0x367   :  { %621 = vmatpush.msrb.mxu1 %v608_v16 }
 0x36d   :  { %v409_v17 = vpop.f32.mrf.mxu0 }
 0x36e   :  { %428 = vrot.lane.b32.xlu2 %v409_v17, %s828_s1 }
 0x370   :  { %v421_v19 = vpop.f32.mrf.mxu1 }
 0x375   :  { %v412_v18 = vpop.f32.mrf.mxu0 }
 0x376   :  { %434 = vrot.lane.b32.xlu1 %v412_v18, %s829_s2  ;;  %v607_v18 = vld [vmem:[%s1242_s11 + $0x50] sm:$0xff] }
 0x377   :  { %622 = vmatpush.msrb.mxu1 %v607_v18 }
 0x37d   :  { %v415_v20 = vpop.f32.mrf.mxu0 }
 0x37e   :  { %444 = vrot.lane.b32.xlu1 %v421_v19, %s830_s22 }
 0x385   :  { %v418_v21 = vpop.f32.mrf.mxu0 }
 0x386   :  { %442 = vrot.lane.b32.xlu0 %v418_v21, %s830_s22 }
 0x38e   :  { %436 = vrot.lane.b32.xlu0 %v415_v20, %s829_s2  ;;  %v606_v20 = vld [vmem:[%s1242_s11 + $0x48] sm:$0xff] }
 0x38f   :  { %623 = vmatpush.msrb.mxu1 %v606_v20 }
 0x391   :  { %624 = vmatpush.msrb.mxu1 %v605_v22 }
 0x393   :  { %625 = vmatpush.msrb.mxu1 %v604_v25 }
 0x3c0   :  { %v427_v26 = vpop.permute.xlu2 %426 }
 0x3c1   :  { %v448_v28 = vsel %vm196_vm1, %v400_v14, %v427_v26  ;;  %v777_v26 = vld [vmem:[%s1238_s7] ss:$0 sm:$0xff] }
 0x3c8   :  { %v429_v34 = vpop.permute.xlu2 %428 }
 0x3c9   :  { %v449_v35 = vsel %vm196_vm1, %v403_v15, %v429_v34  ;;  %v778_v34 = vld [vmem:[%s1239_s8] ss:$0 sm:$0xff] }
 0x3e8   :  { %v435_v27 = vpop.permute.xlu1 %434 }
 0x3e9   :  { %v451_v29 = vsel %vm450_vm3, %v448_v28, %v435_v27 }
 0x3f0   :  { %v445_v38 = vpop.permute.xlu1 %444 }
 0x3f8   :  { %v443_v32 = vpop.permute.xlu0 %442 }
 0x3f9   :  { %v454_v33 = vsel %vm453_vm4, %v451_v29, %v443_v32  ;;  %v603_v29 = vld [vmem:[%s1242_s11 + $0x30] sm:$0xff] }
 0x3fa   :  { %734 = vmatmul.msk.f32.vlgmr.msra.gmra.mxu1 %vm56_vm0, %v454_v33 }
 0x3fb   :  { %626 = vmatpush.msrb.mxu1 %v603_v29 }
 0x400   :  { %v437_v36 = vpop.permute.xlu0 %436 }
 0x401   :  { %v452_v39 = vsel %vm450_vm3, %v449_v35, %v437_v36  ;;  %v602_v35 = vld [vmem:[%s1242_s11 + $0x28] sm:$0xff] }
 0x402   :  { %v455_v40 = vsel %vm453_vm4, %v452_v39, %v445_v38  ;;  %v601_v39 = vld [vmem:[%s1242_s11 + $0x20] sm:$0xff]  ;;  %627 = vmatpush.msrb.mxu1 %v602_v35 }
 0x403   :  { %735 = vmatmul.msk.f32.gmra.mxu1 %vm56_vm0, %v455_v40 }
 0x404   :  { %628 = vmatpush.msrb.mxu1 %v601_v39 }
 0x477   :  { %v487_v42 = vpop.f32.mrf.mxu1 }
 0x478   :  { %v488_v43 = vadd.f32 %v776_v41, %v487_v42  ;;  %v600_v42 = vld [vmem:[%s1242_s11 + $0x18] sm:$0xff] }
 0x479   :  { %629 = vmatpush.msrb.mxu1 %v600_v42 }
 0x47a   :  { %v493_v44 = vadd.f32 %v488_v43, %v936_v7 }
 0x47c   :  { %v497_v45 = vsel %vm56_vm0, %v493_v44, 0.0 }
 0x47d   :  { %498 = vadd.xlane.f32.xlu2 %v497_v45 }
 0x480   :  { %v490_v46 = vpop.f32.mrf.mxu1 }
 0x481   :  { %v491_v47 = vadd.f32 %v776_v41, %v490_v46 }
 0x483   :  { %v494_v48 = vadd.f32 %v491_v47, %v948_v9 }
 0x485   :  { %v500_v49 = vsel %vm56_vm0, %v494_v48, 0.0 }
 0x486   :  { %501 = vadd.xlane.f32.xlu0 %v500_v49  ;;  %v598_v49 = vld [vmem:[%s1242_s11 + $0x8] sm:$0xff] }
 0x4f0   :  { %v499_v7 = vpop.xlane.xlu2 %498 }
 0x4f1   :  { %v510_v56 = vmul.f32 %v1122_v55, %v499_v7 }
 0x4f3   :  { %v512_v57 = vsub.f32 %v493_v44, %v510_v56 }
 0x4f5   :  { %v514_v58 = vmul.f32 %v512_v57, %v512_v57 }
 0x4f7   :  { %v516_v9 = vsel %vm56_vm0, %v514_v58, 0.0 }
 0x4f8   :  { %517 = vadd.xlane.f32.xlu1 %v516_v9 }
 0x4f9   :  { %v502_v59 = vpop.xlane.xlu0 %501 }
 0x4fa   :  { %v511_v60 = vmul.f32 %v1122_v55, %v502_v59 }
 0x4fc   :  { %v1127_v61 = vsub.f32 %v494_v48, %v511_v60  ;;  %v599_v48 = vld [vmem:[%s1242_s11 + $0x10] sm:$0xff] }
 0x4fd   :  { %630 = vmatpush.msrb.mxu1 %v599_v48 }
 0x4fe   :  { %v515_v62 = vmul.f32 %v1127_v61, %v1127_v61 }
 0x4ff   :  { %631 = vmatpush.msrb.mxu1 %v598_v49 }
 0x500   :  { %v519_v63 = vsel %vm56_vm0, %v515_v62, 0.0 }
 0x501   :  { %520 = vadd.xlane.f32.xlu2 %v519_v63  ;;  %632 = vmatpush.msrb.mxu1 %v597_v50 }
 0x56b   :  { %v518_v2 = vpop.xlane.xlu1 %517 }
 0x56c   :  { %v522_v3 = vmul.f32 %v518_v2, %v1122_v55 }
 0x56e   :  { %v524_v4 = vadd.f32 1e-05, %v522_v3 }
 0x570   :  { %817 = vrsqrt.f32 %v524_v4  ;;  %vm532_vm7 = vweird.f32 %v524_v4 }
 0x574   :  { %v521_v10 = vpop.xlane.xlu2 %520 }
 0x575   :  { %v523_v11 = vmul.f32 %v521_v10, %v1122_v55 }
 0x576   :  { %v818_v13 = vpop.eup %817 }
 0x577   :  { %v527_v14 = vmul.f32 %v818_v13, %v524_v4  ;;  %v525_v15 = vadd.f32 1e-05, %v523_v11  ;;  %vm533_vm6 = vweird.f32 %v818_v13 }
 0x578   :  { %vm534_vm8 = vmor %vm532_vm7, %vm533_vm6 }
 0x579   :  { %v528_v17 = vmul.f32 %v818_v13, %v527_v14  ;;  %819 = vrsqrt.f32 %v525_v15  ;;  %vm542_vm10 = vweird.f32 %v525_v15 }
 0x57b   :  { %v529_v19 = vmul.f32 0.5, %v528_v17 }
 0x57d   :  { %v530_v21 = vsub.f32 1.5, %v529_v19 }
 0x57f   :  { %v820_v23 = vpop.eup %819  ;;  %v531_v24 = vmul.f32 %v818_v13, %v530_v21 }
 0x580   :  { %v537_v27 = vmul.f32 %v820_v23, %v525_v15  ;;  %vm543_vm9 = vweird.f32 %v820_v23 }
 0x581   :  { %v535_v28 = vsel %vm534_vm8, %v818_v13, %v531_v24  ;;  %vm544_vm11 = vmor %vm542_vm10, %vm543_vm9  ;;  %v781_v24 = vld [vmem:[%s1244_s13] ss:$0 sm:$0xff] }
 0x582   :  { %v546_v32 = vmul.f32 %v535_v28, %v512_v57  ;;  %v538_v33 = vmul.f32 %v820_v23, %v537_v27  ;;  %v780_v57 = vld [vmem:[%s1243_s12] ss:$0 sm:$0xff] }
 0x584   :  { %v551_v36 = vmul.f32 %v777_v26, %v546_v32  ;;  %v539_v38 = vmul.f32 0.5, %v538_v33 }
 0x586   :  { %v540_v40 = vsub.f32 1.5, %v539_v38  ;;  %v556_v41 = vadd.f32 %v778_v34, %v551_v36 }
 0x588   :  { %v541_v43 = vmul.f32 %v820_v23, %v540_v40  ;;  %736 = vmatmul.msk.f32.vlgmr.msra.gmra.mxu2 %vm56_vm0, %v556_v41 }
 0x58a   :  { %v545_v44 = vsel %vm544_vm11, %v820_v23, %v541_v43 }
 0x58b   :  { %v547_v45 = vmul.f32 %v545_v44, %v1127_v61 }
 0x58d   :  { %v552_v46 = vmul.f32 %v777_v26, %v547_v45 }
 0x58f   :  { %v557_v47 = vadd.f32 %v778_v34, %v552_v46 }
 0x591   :  { %737 = vmatmul.msk.f32.gmra.mxu2 %vm56_vm0, %v557_v47 }
 0x60b   :  { %v589_v52 = vpop.f32.mrf.mxu2 }
 0x60c   :  { %v590_v53 = vadd.f32 %v779_v51, %v589_v52 }
 0x60e   :  { %v595_v54 = vmax.f32 %v590_v53, 0.0 }
 0x610   :  { %633 = vmatmul.f32.vlgmr.msrb.gmra.mxu1 %v595_v54 }
 0x614   :  { %v592_v37 = vpop.f32.mrf.mxu2 }
 0x615   :  { %v593_v7 = vadd.f32 %v779_v51, %v592_v37 }
 0x617   :  { %v596_v56 = vmax.f32 %v593_v7, 0.0 }
 0x619   :  { %636 = vmatmul.f32.gmra.mxu1 %v596_v56 }
 0x68d   :  { %v634_v58 = vpop.f32.mrf.mxu1 }
 0x68e   :  { %v635_v9 = vadd.f32 %v780_v57, %v634_v58 }
 0x690   :  { %v640_v59 = vadd.f32 %v635_v9, %v556_v41 }
 0x692   :  { %v644_v60 = vsel %vm56_vm0, %v640_v59, 0.0 }
 0x693   :  { %645 = vadd.xlane.f32.xlu0 %v644_v60 }
 0x696   :  { %v637_v61 = vpop.f32.mrf.mxu1 }
 0x697   :  { %v638_v62 = vadd.f32 %v780_v57, %v637_v61 }
 0x699   :  { %v641_v63 = vadd.f32 %v638_v62, %v557_v47 }
 0x69b   :  { %v647_v31 = vsel %vm56_vm0, %v641_v63, 0.0 }
 0x69c   :  { %648 = vadd.xlane.f32.xlu1 %v647_v31 }
 0x706   :  { %v646_v0 = vpop.xlane.xlu0 %645 }
 0x707   :  { %v650_v1 = vmul.f32 %v646_v0, %v1122_v55 }
 0x709   :  { %v652_v30 = vsub.f32 %v640_v59, %v650_v1 }
 0x70b   :  { %v654_v2 = vmul.f32 %v652_v30, %v652_v30 }
 0x70d   :  { %v656_v3 = vsel %vm56_vm0, %v654_v2, 0.0 }
 0x70e   :  { %657 = vadd.xlane.f32.xlu2 %v656_v3 }
 0x70f   :  { %v649_v4 = vpop.xlane.xlu1 %648 }
 0x710   :  { %v651_v5 = vmul.f32 %v649_v4, %v1122_v55 }
 0x712   :  { %v653_v6 = vsub.f32 %v641_v63, %v651_v5 }
 0x714   :  { %v655_v8 = vmul.f32 %v653_v6, %v653_v6 }
 0x716   :  { %v659_v10 = vsel %vm56_vm0, %v655_v8, 0.0 }
 0x717   :  { %660 = vadd.xlane.f32.xlu0 %v659_v10 }
 0x781   :  { %v658_v11 = vpop.xlane.xlu2 %657 }
 0x782   :  { %v662_v12 = vmul.f32 %v658_v11, %v1122_v55 }
 0x784   :  { %v664_v13 = vadd.f32 1e-05, %v662_v12 }
 0x786   :  { %821 = vrsqrt.f32 %v664_v13  ;;  %vm672_vm13 = vweird.f32 %v664_v13 }
 0x78a   :  { %v661_v14 = vpop.xlane.xlu0 %660 }
 0x78b   :  { %v663_v15 = vmul.f32 %v661_v14, %v1122_v55  ;;  %v782_v55 = vld [vmem:[%s1245_s14] ss:$0 sm:$0xff] }
 0x78c   :  { %v822_v16 = vpop.eup %821 }
 0x78d   :  { %v667_v17 = vmul.f32 %v822_v16, %v664_v13  ;;  %v665_v18 = vadd.f32 1e-05, %v663_v15  ;;  %vm673_vm12 = vweird.f32 %v822_v16 }
 0x78e   :  { %vm674_vm14 = vmor %vm672_vm13, %vm673_vm12 }
 0x78f   :  { %v668_v19 = vmul.f32 %v822_v16, %v667_v17  ;;  %823 = vrsqrt.f32 %v665_v18  ;;  %vm682_vm1 = vweird.f32 %v665_v18 }
 0x791   :  { %v669_v20 = vmul.f32 0.5, %v668_v19 }
 0x793   :  { %v670_v21 = vsub.f32 1.5, %v669_v20 }
 0x795   :  { %v824_v22 = vpop.eup %823  ;;  %v671_v23 = vmul.f32 %v822_v16, %v670_v21 }
 0x796   :  { %v677_v25 = vmul.f32 %v824_v22, %v665_v18  ;;  %vm683_vm15 = vweird.f32 %v824_v22 }
 0x797   :  { %v675_v26 = vsel %vm674_vm14, %v822_v16, %v671_v23  ;;  %vm684_vm2 = vmor %vm682_vm1, %vm683_vm15 }
 0x798   :  { %v686_v27 = vmul.f32 %v675_v26, %v652_v30  ;;  %v678_v28 = vmul.f32 %v824_v22, %v677_v25 }
 0x79a   :  { %v691_v29 = vmul.f32 %v781_v24, %v686_v27  ;;  %v679_v32 = vmul.f32 0.5, %v678_v28 }
 0x79c   :  { %v696_v33 = vadd.f32 %v782_v55, %v691_v29  ;;  %v680_v34 = vsub.f32 1.5, %v679_v32 }
 0x79e   :  { %698 = vst.msk [vmem:[%s1246_s15] sm:$0xff] %vm56_vm0, %v696_v33  ;;  %v681_v35 = vmul.f32 %v824_v22, %v680_v34 }
 0x7a0   :  { %v685_v36 = vsel %vm684_vm2, %v824_v22, %v681_v35 }
 0x7a1   :  { %v687_v38 = vmul.f32 %v685_v36, %v653_v6 }
 0x7a3   :  { %v692_v39 = vmul.f32 %v781_v24, %v687_v38 }
 0x7a5   :  { %v697_v40 = vadd.f32 %v782_v55, %v692_v39 }
 0x7a7   :  { %699 = vst.msk [vmem:[%s1246_s15 + $0x8] sm:$0xff] %vm56_vm0, %v697_v40 }

</bundles_post_ra>
